<compile_context>
chip_gen: v6e
topology: v6e:2x2x1
jax: 0.10.0
libtpu: 0.0.40
codegen_flags: <defaults>
</compile_context>

<pallas_src>
import numpy as np
import jax
import jax.numpy as jnp
from jax.experimental import pallas as pl
from jax.experimental.pallas import tpu as pltpu


# ----------------------------- Pallas kernels --------------------------------

def _make_branch_kernel(*, C, HW, NB, offsets, residual):
    """Fused ComplexConv + CALayer (+ residual) for NB batch elements per step.

    The NB planar (2C, HW) slabs are concatenated along lanes so every conv tap
    is one MXU dot with N = NB*HW.  `offsets` are the flat lane shifts of the
    taps ((kh-1)*W + (kw-1)); a single centered tap (offset 0) is a 1x1 conv.
    """
    C2 = 2 * C
    T = len(offsets)
    NHW = NB * HW
    inv_hw = 1.0 / HW

    def kernel(x_ref, w_ref, b_ref, w12_ref, *rest):
        if T > 1:
            m_ref, *rest = rest
        if residual:
            rk_ref, o_ref = rest
        else:
            (o_ref,) = rest
        Cr = w12_ref.shape[1] // 2

        # ---- ComplexConv: fold the NB sub-batches into the matmul N axis ----
        xs = [x_ref[n] for n in range(NB)]                          # NB x (2C, HW) f32
        xcat = xs[0] if NB == 1 else jnp.concatenate(xs, axis=-1)   # (2C, NB*HW)
        # bias-initialised f32 accumulator (bias folded in, review item 8)
        acc = jnp.broadcast_to(b_ref[...], (C2, NHW))
        for t in range(T):
            off = offsets[t]
            if off == 0:
                tap_in = xcat                       # centre tap: no shift, no mask
            else:
                # roll(x, s)[q] = x[(q - s) % NHW]; s = (-off) % NHW reads x[q+off].
                # Out-of-image (and cross-sub-batch) wraps are zeroed by the mask.
                tap_in = pltpu.roll(xcat, (-off) % NHW, axis=1) * m_ref[t]
            # bf16 MXU operands, f32 accumulation (review item 4).
            acc = acc + jnp.dot(w_ref[t], tap_in.astype(jnp.bfloat16),
                                preferred_element_type=jnp.float32)

        # ---- CALayer (+ fused residual adds) per sub-batch ----
        w12 = w12_ref[...]
        w1t, w2 = w12[:, :Cr], w12[:, Cr:]                          # (C, Cr) each
        for n in range(NB):
            seg = acc[:, n * HW:(n + 1) * HW]                       # (2C, HW), 128-aligned
            cr, ci = seg[:C, :], seg[C:, :]
            pooled = jnp.sum(cr * cr + ci * ci, axis=1, keepdims=True) * inv_hw  # (C,1)
            h = jnp.maximum(jnp.sum(pooled * w1t, axis=0, keepdims=True), 0.0)   # (1,Cr)
            s = jax.nn.sigmoid(jnp.sum(w2 * h, axis=1, keepdims=True))           # (C,1)
            out_n = seg * jnp.concatenate([s, s], axis=0)
            if residual:
                out_n = out_n + xs[n] + rk_ref[n]
            o_ref[n] = out_n.astype(o_ref.dtype)

    return kernel


# ------------------------------- dispatcher ------------------------------------

def _run_branch(x2, wtaps, b2, w12, *, nb, offsets=(0,), masks=None, rk2=None):
    """One fused (ComplexConv + CALayer [+ residual]) pallas_call over the batch."""
    B, C2, HW = x2.shape
    C = C2 // 2
    T = len(offsets)
    assert wtaps.shape[0] == T and B % nb == 0
    grid = (B // nb,)

    kernel = _make_branch_kernel(C=C, HW=HW, NB=nb, offsets=offsets,
                                 residual=rk2 is not None)

    xspec = pl.BlockSpec((nb, C2, HW), lambda g: (g, 0, 0))
    in_specs = [
        xspec,
        pl.BlockSpec((T, C2, C2), lambda g: (0, 0, 0)),
        pl.BlockSpec((C2, 1), lambda g: (0, 0)),
        pl.BlockSpec(w12.shape, lambda g: (0, 0)),
    ]
    args = [x2, wtaps, b2, w12]
    if T > 1:
        in_specs.append(pl.BlockSpec(masks.shape, lambda g: (0, 0, 0)))
        args.append(masks)
    if rk2 is not None:
        in_specs.append(xspec)
        args.append(rk2)

    # Advisory cost estimate so XLA can schedule the FFTs around the custom call.
    n_stream = 2 + (1 if rk2 is not None else 0)
    cost = pl.CostEstimate(
        flops=int(2 * C2 * C2 * T * HW * B + 10 * C2 * HW * B),
        transcendentals=int(2 * B * C),
        bytes_accessed=int(n_stream * B * C2 * HW * 4 + wtaps.size * 2 + b2.size * 4
                           + w12.size * 4 + (masks.size * 4 if masks is not None else 0)),
    )

    return pl.pallas_call(
        kernel,
        grid=grid,
        in_specs=in_specs,
        out_specs=xspec,
        out_shape=jax.ShapeDtypeStruct((B, C2, HW), jnp.float32),
        compiler_params=pltpu.CompilerParams(dimension_semantics=("parallel",)),
        cost_estimate=cost,
    )(*args)


# --------------------- weight / mask / layout plumbing -------------------------

def _fuse_tap_weights(wr, wi):
    """PyTorch (Cout, Cin, KH, KW) real/imag -> (KH*KW, 2Cout, 2Cin) block weights."""
    C = wr.shape[0]
    KH, KW = wr.shape[2], wr.shape[3]
    top = jnp.concatenate([wr, -wi], axis=1)           # real rows
    bot = jnp.concatenate([wi, wr], axis=1)            # imag rows
    w = jnp.concatenate([top, bot], axis=0)            # (2C, 2C, KH, KW)
    return jnp.transpose(w, (2, 3, 0, 1)).reshape(KH * KW, 2 * C, 2 * C)


def _fuse_bias(br, bi):
    # each internal Conv2d carries its own bias -> effective planar biases
    return jnp.concatenate([br - bi, br + bi]).reshape(-1, 1)


def _tap_masks(H, W, nb):
    """0/1 validity mask per 3x3 tap on the flat (h*W + w) lane axis, tiled nb
    times to line up with the batch-folded (2C, nb*H*W) operand."""
    hw = H * W
    hh = np.arange(hw) // W
    ww = np.arange(hw) % W
    rows = []
    for kh in range(3):
        for kw in range(3):
            ok = ((hh + kh - 1 >= 0) & (hh + kh - 1 < H) &
                  (ww + kw - 1 >= 0) & (ww + kw - 1 < W)).astype(np.float32)
            rows.append(np.tile(ok, nb))
    return jnp.asarray(np.stack(rows)[:, None, :])      # (9, 1, nb*H*W)


def _pick_nb(B):
    """Batches per grid step: amortise the per-step overhead while keeping >= 2
    'parallel' grid steps so both v7x TensorCores stay busy."""
    for nb in range(max(1, B // 2), 0, -1):
        if B % nb == 0:
            return nb
    return 1


def _to_planar(x):
    """(B, C, H, W, 2) -> (B, 2C, H*W): real rows then imag rows (boundary only)."""
    B, C, H, W, _ = x.shape
    return jnp.concatenate([x[..., 0], x[..., 1]], axis=1).reshape(B, 2 * C, H * W)


def _from_planar(p, C, H, W):
    """(B, 2C, H*W) -> (B, C, H, W, 2) (boundary only)."""
    p = p.reshape(p.shape[0], 2 * C, H, W)
    return jnp.stack([p[:, :C], p[:, C:]], axis=-1)


# TODO(synk): the FFT has no Pallas primitive; the centered orthonormal 2-D FFT
# is plain JAX, but operates directly on the planar layout (no repack round trips).
def _fft2c_planar(p, C, H, W, inverse=False):
    B = p.shape[0]
    xc = (p[:, :C] + 1j * p[:, C:]).reshape(B, C, H, W)
    xc = jnp.fft.ifftshift(xc, axes=(-2, -1))
    xc = (jnp.fft.ifft2 if inverse else jnp.fft.fft2)(xc, axes=(-2, -1), norm="ortho")
    xc = jnp.fft.fftshift(xc, axes=(-2, -1)).reshape(B, C, H * W)
    return jnp.concatenate([jnp.real(xc), jnp.imag(xc)], axis=1).astype(p.dtype)


# ----------------------------- RCAB forward -----------------------------------

@jax.jit
def rcab_forward(x, p):
    """RCAB(flag='HF'): res + x + ifft2c(res_k); two fused Pallas kernels."""
    B, C, H, W, _ = x.shape
    nb = _pick_nb(B)
    x2 = _to_planar(x)

    wtaps = _fuse_tap_weights(p["wr"], p["wi"]).astype(jnp.bfloat16)        # (9,2C,2C)
    wtaps_k = _fuse_tap_weights(p["k_wr"], p["k_wi"]).astype(jnp.bfloat16)  # (1,2C,2C)
    b2, b2_k = _fuse_bias(p["br"], p["bi"]), _fuse_bias(p["k_br"], p["k_bi"])
    w12 = jnp.concatenate([p["ca_w1"].T, p["ca_w2"]], axis=1)               # (C, 2C/r)
    w12_k = jnp.concatenate([p["ca_k_w1"].T, p["ca_k_w2"]], axis=1)

    # ---- k-space branch: body_k = ComplexConv(1x1) -> CALayer ----
    xk2 = _fft2c_planar(x2, C, H, W)
    resk2 = _run_branch(xk2, wtaps_k, b2_k, w12_k, nb=nb)
    rk2 = _fft2c_planar(resk2, C, H, W, inverse=True)

    # ---- spatial branch: CA(Conv3x3(x)) + x + ifft2c(res_k), all fused ----
    offsets = tuple((kh - 1) * W + (kw - 1) for kh in range(3) for kw in range(3))
    out2 = _run_branch(x2, wtaps, b2, w12, nb=nb, offsets=offsets,
                       masks=_tap_masks(H, W, nb), rk2=rk2)
    return _from_planar(out2, C, H, W)


# ------------------------- pure-JAX reference ---------------------------------

def fft2c(x):
    xc = x[..., 0] + 1j * x[..., 1]
    k = jnp.fft.fftshift(jnp.fft.fft2(jnp.fft.ifftshift(xc, axes=(-2, -1)),
                                      axes=(-2, -1), norm="ortho"), axes=(-2, -1))
    return jnp.stack([jnp.real(k), jnp.imag(k)], axis=-1).astype(x.dtype)


def ifft2c(x):
    xc = x[..., 0] + 1j * x[..., 1]
    img = jnp.fft.fftshift(jnp.fft.ifft2(jnp.fft.ifftshift(xc, axes=(-2, -1)),
                                         axes=(-2, -1), norm="ortho"), axes=(-2, -1))
    return jnp.stack([jnp.real(img), jnp.imag(img)], axis=-1).astype(x.dtype)


def _ref_complex_conv(x, wr_pt, wi_pt, br, bi, padding):
    wr = jnp.transpose(wr_pt, (2, 3, 1, 0))   # (Cout,Cin,KH,KW) -> HWIO
    wi = jnp.transpose(wi_pt, (2, 3, 1, 0))
    xr = jnp.transpose(x[..., 0], (0, 2, 3, 1))
    xi = jnp.transpose(x[..., 1], (0, 2, 3, 1))
    dn = ("NHWC", "HWIO", "NHWC")
    pad = [(padding, padding), (padding, padding)]
    conv = lambda a, w: jax.lax.conv_general_dilated(a, w, (1, 1), pad,
                                                     dimension_numbers=dn)
    real = (conv(xr, wr) + br) - (conv(xi, wi) + bi)
    imag = (conv(xi, wr) + br) + (conv(xr, wi) + bi)
    out = jnp.stack([real, imag], axis=-1)
    return jnp.transpose(out, (0, 3, 1, 2, 4))


def _ref_ca(x, w1, w2):
    # w1: (Cr, C), w2: (C, Cr) -- PyTorch nn.Linear layouts
    x_abs = jnp.sum(x ** 2, axis=-1)
    y = jnp.mean(x_abs, axis=(2, 3))
    y = jnp.maximum(y @ w1.T, 0.0)
    y = jax.nn.sigmoid(y @ w2.T)
    return x * y[:, :, None, None, None]


def rcab_reference(x, p):
    x_k = fft2c(x)
    res_k = _ref_complex_conv(x_k, p["k_wr"], p["k_wi"], p["k_br"], p["k_bi"], 0)
    res_k = _ref_ca(res_k, p["ca_k_w1"], p["ca_k_w2"])
    res = _ref_complex_conv(x, p["wr"], p["wi"], p["br"], p["bi"], 1)
    res = _ref_ca(res, p["ca_w1"], p["ca_w2"])
    return res + x + ifft2c(res_k)


# --------------------------------- main ----------------------------------------

if __name__ == "__main__":
    B, C, H, W = 4, 8, 16, 16          # num_feat=8, reduction=4, nb=2 -> grid=(2,)
    RED = 4
    ks = jax.random.split(jax.random.PRNGKey(0), 13)

    def nrm(k, shape, scale=0.1):
        return scale * jax.random.normal(k, shape, dtype=jnp.float32)

    # Parameters in PyTorch layouts (Conv2d: (Cout,Cin,KH,KW), Linear: (out,in)).
    params = {
        "wr": nrm(ks[0], (C, C, 3, 3)), "wi": nrm(ks[1], (C, C, 3, 3)),
        "br": nrm(ks[2], (C,)), "bi": nrm(ks[3], (C,)),
        "k_wr": nrm(ks[4], (C, C, 1, 1)), "k_wi": nrm(ks[5], (C, C, 1, 1)),
        "k_br": nrm(ks[6], (C,)), "k_bi": nrm(ks[7], (C,)),
        "ca_w1": nrm(ks[8], (C // RED, C)),   # Linear(C -> C//r), no bias
        "ca_w2": nrm(ks[9], (C, C // RED)),   # Linear(C//r -> C), no bias
        "ca_k_w1": nrm(ks[10], (C // RED, C)),
        "ca_k_w2": nrm(ks[11], (C, C // RED)),
    }

    x = jax.random.normal(ks[12], (B, C, H, W, 2), jnp.float32)

    out = jax.block_until_ready(rcab_forward(x, params))
    ref = jax.block_until_ready(rcab_reference(x, params))
    assert out.shape == (B, C, H, W, 2)
    # Tolerance reflects the deliberate bf16 rounding of the conv matmul
    # operands (f32 accumulation) vs the pure-f32 reference.
    np.testing.assert_allclose(np.asarray(out), np.asarray(ref),
                               rtol=2e-2, atol=2e-2)
    print("KERNEL_OK")
</pallas_src>

<mosaic_0001>
module attributes {stable_mosaic.version = 11 : i64} {
  func.func @kernel(%arg0: i32, %arg1: memref<2x16x256xf32, #tpu.memory_space<vmem>>, %arg2: memref<1x16x16xbf16, #tpu.memory_space<vmem>>, %arg3: memref<16x1xf32, #tpu.memory_space<vmem>>, %arg4: memref<8x4xf32, #tpu.memory_space<vmem>>, %arg5: memref<2x16x256xf32, #tpu.memory_space<vmem>>) attributes {dimension_semantics = [#tpu.dimension_semantics<parallel>], iteration_bounds = array<i64: 2>, scalar_prefetch = 0 : i64, scratch_operands = 0 : i64, tpu.core_type = #tpu.core_type<tc>, window_params = [{transform_indices = @transform_0, window_bounds = array<i64: 2, 16, 256>}, {pipeline_mode = #tpu.pipeline_mode<synchronous>, transform_indices = @transform_1, window_bounds = array<i64: 1, 16, 16>}, {pipeline_mode = #tpu.pipeline_mode<synchronous>, transform_indices = @transform_2, window_bounds = array<i64: 16, 1>}, {pipeline_mode = #tpu.pipeline_mode<synchronous>, transform_indices = @transform_3, window_bounds = array<i64: 8, 4>}, {transform_indices = @transform_4, window_bounds = array<i64: 2, 16, 256>}]} {
    %c0 = arith.constant 0 : index
    %c0_0 = arith.constant 0 : index
    %c0_1 = arith.constant 0 : index
    %0 = vector.load %arg1[%c0, %c0_0, %c0_1] : memref<2x16x256xf32, #tpu.memory_space<vmem>>, vector<1x16x256xf32>
    %1 = vector.shape_cast %0 : vector<1x16x256xf32> to vector<16x256xf32>
    %c1 = arith.constant 1 : index
    %c0_2 = arith.constant 0 : index
    %c0_3 = arith.constant 0 : index
    %2 = vector.load %arg1[%c1, %c0_2, %c0_3] : memref<2x16x256xf32, #tpu.memory_space<vmem>>, vector<1x16x256xf32>
    %3 = vector.shape_cast %2 : vector<1x16x256xf32> to vector<16x256xf32>
    %4 = tpu.concatenate %1, %3 in 1 : vector<16x256xf32>, vector<16x256xf32> -> vector<16x512xf32>
    %c0_4 = arith.constant 0 : index
    %c0_5 = arith.constant 0 : index
    %5 = vector.load %arg3[%c0_4, %c0_5] : memref<16x1xf32, #tpu.memory_space<vmem>>, vector<16x1xf32>
    %6 = vector.shape_cast %5 : vector<16x1xf32> to vector<16x1xf32>
    %7 = vector.broadcast %6 : vector<16x1xf32> to vector<16x512xf32>
    %c0_6 = arith.constant 0 : index
    %c0_7 = arith.constant 0 : index
    %c0_8 = arith.constant 0 : index
    %8 = vector.load %arg2[%c0_6, %c0_7, %c0_8] : memref<1x16x16xbf16, #tpu.memory_space<vmem>>, vector<1x16x16xbf16>
    %9 = vector.shape_cast %8 : vector<1x16x16xbf16> to vector<16x16xbf16>
    %10 = arith.truncf %4 : vector<16x512xf32> to vector<16x512xbf16>
    %cst = arith.constant dense<0.000000e+00> : vector<16x512xf32>
    %11 = tpu.matmul %9, %10, %cst {dimension_numbers = #tpu.dot_dimension_numbers<[1], [0], [0], [1], [0, 0, 1, 1], [], []>} : vector<16x16xbf16>, vector<16x512xbf16>, vector<16x512xf32> -> vector<16x512xf32>
    %12 = arith.addf %7, %11 : vector<16x512xf32>
    %c0_9 = arith.constant 0 : index
    %c0_10 = arith.constant 0 : index
    %13 = vector.load %arg4[%c0_9, %c0_10] : memref<8x4xf32, #tpu.memory_space<vmem>>, vector<8x4xf32>
    %14 = vector.extract_strided_slice %13 {offsets = [0, 0], sizes = [8, 2], strides = [1, 1]} : vector<8x4xf32> to vector<8x2xf32>
    %15 = vector.extract_strided_slice %13 {offsets = [0, 2], sizes = [8, 2], strides = [1, 1]} : vector<8x4xf32> to vector<8x2xf32>
    %16 = vector.extract_strided_slice %12 {offsets = [0, 0], sizes = [16, 256], strides = [1, 1]} : vector<16x512xf32> to vector<16x256xf32>
    %17 = vector.extract_strided_slice %16 {offsets = [0, 0], sizes = [8, 256], strides = [1, 1]} : vector<16x256xf32> to vector<8x256xf32>
    %18 = vector.extract_strided_slice %16 {offsets = [8, 0], sizes = [8, 256], strides = [1, 1]} : vector<16x256xf32> to vector<8x256xf32>
    %19 = arith.mulf %17, %17 : vector<8x256xf32>
    %20 = arith.mulf %18, %18 : vector<8x256xf32>
    %21 = arith.addf %19, %20 : vector<8x256xf32>
    %cst_11 = arith.constant dense<0.000000e+00> : vector<8xf32>
    %22 = vector.multi_reduction <add>, %21, %cst_11 [1] : vector<8x256xf32> to vector<8xf32>
    %23 = vector.shape_cast %22 : vector<8xf32> to vector<8x1xf32>
    %cst_12 = arith.constant 3.906250e-03 : f32
    %24 = vector.broadcast %cst_12 : f32 to vector<8x1xf32>
    %25 = arith.mulf %23, %24 : vector<8x1xf32>
    %26 = vector.broadcast %25 : vector<8x1xf32> to vector<8x2xf32>
    %27 = arith.mulf %26, %14 : vector<8x2xf32>
    %cst_13 = arith.constant dense<0.000000e+00> : vector<2xf32>
    %28 = vector.multi_reduction <add>, %27, %cst_13 [0] : vector<8x2xf32> to vector<2xf32>
    %29 = vector.shape_cast %28 : vector<2xf32> to vector<1x2xf32>
    %cst_14 = arith.constant 0.000000e+00 : f32
    %30 = vector.broadcast %cst_14 : f32 to vector<1x2xf32>
    %31 = arith.maximumf %29, %30 : vector<1x2xf32>
    %32 = vector.broadcast %31 : vector<1x2xf32> to vector<8x2xf32>
    %33 = arith.mulf %15, %32 : vector<8x2xf32>
    %cst_15 = arith.constant dense<0.000000e+00> : vector<8xf32>
    %34 = vector.multi_reduction <add>, %33, %cst_15 [1] : vector<8x2xf32> to vector<8xf32>
    %35 = vector.shape_cast %34 : vector<8xf32> to vector<8x1xf32>
    %36 = arith.negf %35 : vector<8x1xf32>
    %37 = math.exp %36 : vector<8x1xf32>
    %cst_16 = arith.constant 1.000000e+00 : f32
    %38 = vector.broadcast %cst_16 : f32 to vector<8x1xf32>
    %39 = arith.addf %38, %37 : vector<8x1xf32>
    %40 = arith.divf %38, %39 : vector<8x1xf32>
    %41 = tpu.concatenate %40, %40 in 0 : vector<8x1xf32>, vector<8x1xf32> -> vector<16x1xf32>
    %42 = vector.broadcast %41 : vector<16x1xf32> to vector<16x256xf32>
    %43 = arith.mulf %16, %42 : vector<16x256xf32>
    %c0_17 = arith.constant 0 : index
    %c0_18 = arith.constant 0 : index
    %c0_19 = arith.constant 0 : index
    %44 = vector.load %arg5[%c0_17, %c0_18, %c0_19] : memref<2x16x256xf32, #tpu.memory_space<vmem>>, vector<1x16x256xf32>
    %45 = vector.shape_cast %44 : vector<1x16x256xf32> to vector<16x256xf32>
    %46 = vector.shape_cast %43 : vector<16x256xf32> to vector<1x16x256xf32>
    tpu.vector_store %arg5[%c0_17, %c0_18, %c0_19], %46 {strides = array<i32>} : memref<2x16x256xf32, #tpu.memory_space<vmem>>, vector<1x16x256xf32>,
    %47 = vector.extract_strided_slice %12 {offsets = [0, 256], sizes = [16, 256], strides = [1, 1]} : vector<16x512xf32> to vector<16x256xf32>
    %48 = vector.extract_strided_slice %47 {offsets = [0, 0], sizes = [8, 256], strides = [1, 1]} : vector<16x256xf32> to vector<8x256xf32>
    %49 = vector.extract_strided_slice %47 {offsets = [8, 0], sizes = [8, 256], strides = [1, 1]} : vector<16x256xf32> to vector<8x256xf32>
    %50 = arith.mulf %48, %48 : vector<8x256xf32>
    %51 = arith.mulf %49, %49 : vector<8x256xf32>
    %52 = arith.addf %50, %51 : vector<8x256xf32>
    %cst_20 = arith.constant dense<0.000000e+00> : vector<8xf32>
    %53 = vector.multi_reduction <add>, %52, %cst_20 [1] : vector<8x256xf32> to vector<8xf32>
    %54 = vector.shape_cast %53 : vector<8xf32> to vector<8x1xf32>
    %cst_21 = arith.constant 3.906250e-03 : f32
    %55 = vector.broadcast %cst_21 : f32 to vector<8x1xf32>
    %56 = arith.mulf %54, %55 : vector<8x1xf32>
    %57 = vector.broadcast %56 : vector<8x1xf32> to vector<8x2xf32>
    %58 = arith.mulf %57, %14 : vector<8x2xf32>
    %cst_22 = arith.constant dense<0.000000e+00> : vector<2xf32>
    %59 = vector.multi_reduction <add>, %58, %cst_22 [0] : vector<8x2xf32> to vector<2xf32>
    %60 = vector.shape_cast %59 : vector<2xf32> to vector<1x2xf32>
    %cst_23 = arith.constant 0.000000e+00 : f32
    %61 = vector.broadcast %cst_23 : f32 to vector<1x2xf32>
    %62 = arith.maximumf %60, %61 : vector<1x2xf32>
    %63 = vector.broadcast %62 : vector<1x2xf32> to vector<8x2xf32>
    %64 = arith.mulf %15, %63 : vector<8x2xf32>
    %cst_24 = arith.constant dense<0.000000e+00> : vector<8xf32>
    %65 = vector.multi_reduction <add>, %64, %cst_24 [1] : vector<8x2xf32> to vector<8xf32>
    %66 = vector.shape_cast %65 : vector<8xf32> to vector<8x1xf32>
    %67 = arith.negf %66 : vector<8x1xf32>
    %68 = math.exp %67 : vector<8x1xf32>
    %cst_25 = arith.constant 1.000000e+00 : f32
    %69 = vector.broadcast %cst_25 : f32 to vector<8x1xf32>
    %70 = arith.addf %69, %68 : vector<8x1xf32>
    %71 = arith.divf %69, %70 : vector<8x1xf32>
    %72 = tpu.concatenate %71, %71 in 0 : vector<8x1xf32>, vector<8x1xf32> -> vector<16x1xf32>
    %73 = vector.broadcast %72 : vector<16x1xf32> to vector<16x256xf32>
    %74 = arith.mulf %47, %73 : vector<16x256xf32>
    %c1_26 = arith.constant 1 : index
    %c0_27 = arith.constant 0 : index
    %c0_28 = arith.constant 0 : index
    %75 = vector.load %arg5[%c1_26, %c0_27, %c0_28] : memref<2x16x256xf32, #tpu.memory_space<vmem>>, vector<1x16x256xf32>
    %76 = vector.shape_cast %75 : vector<1x16x256xf32> to vector<16x256xf32>
    %77 = vector.shape_cast %74 : vector<16x256xf32> to vector<1x16x256xf32>
    tpu.vector_store %arg5[%c1_26, %c0_27, %c0_28], %77 {strides = array<i32>} : memref<2x16x256xf32, #tpu.memory_space<vmem>>, vector<1x16x256xf32>,
    return
  }
  func.func @transform_0(%arg0: i32) -> (i32, i32, i32) {
    %c0_i32 = arith.constant 0 : i32
    %c0_i32_0 = arith.constant 0 : i32
    %c0_i32_1 = arith.constant 0 : i32
    return %arg0, %c0_i32, %c0_i32_0 : i32, i32, i32
  }
  func.func @transform_1(%arg0: i32) -> (i32, i32, i32) {
    %c0_i32 = arith.constant 0 : i32
    %c0_i32_0 = arith.constant 0 : i32
    %c0_i32_1 = arith.constant 0 : i32
    %c0_i32_2 = arith.constant 0 : i32
    return %c0_i32, %c0_i32_0, %c0_i32_1 : i32, i32, i32
  }
  func.func @transform_2(%arg0: i32) -> (i32, i32) {
    %c0_i32 = arith.constant 0 : i32
    %c0_i32_0 = arith.constant 0 : i32
    %c0_i32_1 = arith.constant 0 : i32
    return %c0_i32, %c0_i32_0 : i32, i32
  }
  func.func @transform_3(%arg0: i32) -> (i32, i32) {
    %c0_i32 = arith.constant 0 : i32
    %c0_i32_0 = arith.constant 0 : i32
    %c0_i32_1 = arith.constant 0 : i32
    return %c0_i32, %c0_i32_0 : i32, i32
  }
  func.func @transform_4(%arg0: i32) -> (i32, i32, i32) {
    %c0_i32 = arith.constant 0 : i32
    %c0_i32_0 = arith.constant 0 : i32
    %c0_i32_1 = arith.constant 0 : i32
    return %arg0, %c0_i32, %c0_i32_0 : i32, i32, i32
  }
}

module attributes {stable_mosaic.version = 11 : i64} {
  func.func @kernel(%arg0: i32, %arg1: memref<2x16x256xf32, #tpu.memory_space<vmem>>, %arg2: memref<9x16x16xbf16, #tpu.memory_space<vmem>>, %arg3: memref<16x1xf32, #tpu.memory_space<vmem>>, %arg4: memref<8x4xf32, #tpu.memory_space<vmem>>, %arg5: memref<9x1x512xf32, #tpu.memory_space<vmem>>, %arg6: memref<2x16x256xf32, #tpu.memory_space<vmem>>, %arg7: memref<2x16x256xf32, #tpu.memory_space<vmem>>) attributes {dimension_semantics = [#tpu.dimension_semantics<parallel>], iteration_bounds = array<i64: 2>, scalar_prefetch = 0 : i64, scratch_operands = 0 : i64, tpu.core_type = #tpu.core_type<tc>, window_params = [{transform_indices = @transform_0, window_bounds = array<i64: 2, 16, 256>}, {pipeline_mode = #tpu.pipeline_mode<synchronous>, transform_indices = @transform_1, window_bounds = array<i64: 9, 16, 16>}, {pipeline_mode = #tpu.pipeline_mode<synchronous>, transform_indices = @transform_2, window_bounds = array<i64: 16, 1>}, {pipeline_mode = #tpu.pipeline_mode<synchronous>, transform_indices = @transform_3, window_bounds = array<i64: 8, 4>}, {pipeline_mode = #tpu.pipeline_mode<synchronous>, transform_indices = @transform_4, window_bounds = array<i64: 9, 1, 512>}, {transform_indices = @transform_5, window_bounds = array<i64: 2, 16, 256>}, {transform_indices = @transform_6, window_bounds = array<i64: 2, 16, 256>}]} {
    %c0 = arith.constant 0 : index
    %c0_0 = arith.constant 0 : index
    %c0_1 = arith.constant 0 : index
    %0 = vector.load %arg1[%c0, %c0_0, %c0_1] : memref<2x16x256xf32, #tpu.memory_space<vmem>>, vector<1x16x256xf32>
    %1 = vector.shape_cast %0 : vector<1x16x256xf32> to vector<16x256xf32>
    %c1 = arith.constant 1 : index
    %c0_2 = arith.constant 0 : index
    %c0_3 = arith.constant 0 : index
    %2 = vector.load %arg1[%c1, %c0_2, %c0_3] : memref<2x16x256xf32, #tpu.memory_space<vmem>>, vector<1x16x256xf32>
    %3 = vector.shape_cast %2 : vector<1x16x256xf32> to vector<16x256xf32>
    %4 = tpu.concatenate %1, %3 in 1 : vector<16x256xf32>, vector<16x256xf32> -> vector<16x512xf32>
    %c0_4 = arith.constant 0 : index
    %c0_5 = arith.constant 0 : index
    %5 = vector.load %arg3[%c0_4, %c0_5] : memref<16x1xf32, #tpu.memory_space<vmem>>, vector<16x1xf32>
    %6 = vector.shape_cast %5 : vector<16x1xf32> to vector<16x1xf32>
    %7 = vector.broadcast %6 : vector<16x1xf32> to vector<16x512xf32>
    %c17_i32 = arith.constant 17 : i32
    %8 = tpu.dynamic_rotate %4 by %c17_i32 dim 1 : vector<16x512xf32>, i32 -> vector<16x512xf32>
    %c0_6 = arith.constant 0 : index
    %c0_7 = arith.constant 0 : index
    %c0_8 = arith.constant 0 : index
    %9 = vector.load %arg5[%c0_6, %c0_7, %c0_8] : memref<9x1x512xf32, #tpu.memory_space<vmem>>, vector<1x1x512xf32>
    %10 = vector.shape_cast %9 : vector<1x1x512xf32> to vector<1x512xf32>
    %11 = vector.broadcast %10 : vector<1x512xf32> to vector<16x512xf32>
    %12 = arith.mulf %8, %11 : vector<16x512xf32>
    %c0_9 = arith.constant 0 : index
    %c0_10 = arith.constant 0 : index
    %c0_11 = arith.constant 0 : index
    %13 = vector.load %arg2[%c0_9, %c0_10, %c0_11] : memref<9x16x16xbf16, #tpu.memory_space<vmem>>, vector<1x16x16xbf16>
    %14 = vector.shape_cast %13 : vector<1x16x16xbf16> to vector<16x16xbf16>
    %15 = arith.truncf %12 : vector<16x512xf32> to vector<16x512xbf16>
    %cst = arith.constant dense<0.000000e+00> : vector<16x512xf32>
    %16 = tpu.matmul %14, %15, %cst {dimension_numbers = #tpu.dot_dimension_numbers<[1], [0], [0], [1], [0, 0, 1, 1], [], []>} : vector<16x16xbf16>, vector<16x512xbf16>, vector<16x512xf32> -> vector<16x512xf32>
    %17 = arith.addf %7, %16 : vector<16x512xf32>
    %c16_i32 = arith.constant 16 : i32
    %18 = tpu.dynamic_rotate %4 by %c16_i32 dim 1 : vector<16x512xf32>, i32 -> vector<16x512xf32>
    %c1_12 = arith.constant 1 : index
    %c0_13 = arith.constant 0 : index
    %c0_14 = arith.constant 0 : index
    %19 = vector.load %arg5[%c1_12, %c0_13, %c0_14] : memref<9x1x512xf32, #tpu.memory_space<vmem>>, vector<1x1x512xf32>
    %20 = vector.shape_cast %19 : vector<1x1x512xf32> to vector<1x512xf32>
    %21 = vector.broadcast %20 : vector<1x512xf32> to vector<16x512xf32>
    %22 = arith.mulf %18, %21 : vector<16x512xf32>
    %c1_15 = arith.constant 1 : index
    %c0_16 = arith.constant 0 : index
    %c0_17 = arith.constant 0 : index
    %23 = vector.load %arg2[%c1_15, %c0_16, %c0_17] : memref<9x16x16xbf16, #tpu.memory_space<vmem>>, vector<1x16x16xbf16>
    %24 = vector.shape_cast %23 : vector<1x16x16xbf16> to vector<16x16xbf16>
    %25 = arith.truncf %22 : vector<16x512xf32> to vector<16x512xbf16>
    %cst_18 = arith.constant dense<0.000000e+00> : vector<16x512xf32>
    %26 = tpu.matmul %24, %25, %cst_18 {dimension_numbers = #tpu.dot_dimension_numbers<[1], [0], [0], [1], [0, 0, 1, 1], [], []>} : vector<16x16xbf16>, vector<16x512xbf16>, vector<16x512xf32> -> vector<16x512xf32>
    %27 = arith.addf %17, %26 : vector<16x512xf32>
    %c15_i32 = arith.constant 15 : i32
    %28 = tpu.dynamic_rotate %4 by %c15_i32 dim 1 : vector<16x512xf32>, i32 -> vector<16x512xf32>
    %c2 = arith.constant 2 : index
    %c0_19 = arith.constant 0 : index
    %c0_20 = arith.constant 0 : index
    %29 = vector.load %arg5[%c2, %c0_19, %c0_20] : memref<9x1x512xf32, #tpu.memory_space<vmem>>, vector<1x1x512xf32>
    %30 = vector.shape_cast %29 : vector<1x1x512xf32> to vector<1x512xf32>
    %31 = vector.broadcast %30 : vector<1x512xf32> to vector<16x512xf32>
    %32 = arith.mulf %28, %31 : vector<16x512xf32>
    %c2_21 = arith.constant 2 : index
    %c0_22 = arith.constant 0 : index
    %c0_23 = arith.constant 0 : index
    %33 = vector.load %arg2[%c2_21, %c0_22, %c0_23] : memref<9x16x16xbf16, #tpu.memory_space<vmem>>, vector<1x16x16xbf16>
    %34 = vector.shape_cast %33 : vector<1x16x16xbf16> to vector<16x16xbf16>
    %35 = arith.truncf %32 : vector<16x512xf32> to vector<16x512xbf16>
    %cst_24 = arith.constant dense<0.000000e+00> : vector<16x512xf32>
    %36 = tpu.matmul %34, %35, %cst_24 {dimension_numbers = #tpu.dot_dimension_numbers<[1], [0], [0], [1], [0, 0, 1, 1], [], []>} : vector<16x16xbf16>, vector<16x512xbf16>, vector<16x512xf32> -> vector<16x512xf32>
    %37 = arith.addf %27, %36 : vector<16x512xf32>
    %c1_i32 = arith.constant 1 : i32
    %38 = tpu.dynamic_rotate %4 by %c1_i32 dim 1 : vector<16x512xf32>, i32 -> vector<16x512xf32>
    %c3 = arith.constant 3 : index
    %c0_25 = arith.constant 0 : index
    %c0_26 = arith.constant 0 : index
    %39 = vector.load %arg5[%c3, %c0_25, %c0_26] : memref<9x1x512xf32, #tpu.memory_space<vmem>>, vector<1x1x512xf32>
    %40 = vector.shape_cast %39 : vector<1x1x512xf32> to vector<1x512xf32>
    %41 = vector.broadcast %40 : vector<1x512xf32> to vector<16x512xf32>
    %42 = arith.mulf %38, %41 : vector<16x512xf32>
    %c3_27 = arith.constant 3 : index
    %c0_28 = arith.constant 0 : index
    %c0_29 = arith.constant 0 : index
    %43 = vector.load %arg2[%c3_27, %c0_28, %c0_29] : memref<9x16x16xbf16, #tpu.memory_space<vmem>>, vector<1x16x16xbf16>
    %44 = vector.shape_cast %43 : vector<1x16x16xbf16> to vector<16x16xbf16>
    %45 = arith.truncf %42 : vector<16x512xf32> to vector<16x512xbf16>
    %cst_30 = arith.constant dense<0.000000e+00> : vector<16x512xf32>
    %46 = tpu.matmul %44, %45, %cst_30 {dimension_numbers = #tpu.dot_dimension_numbers<[1], [0], [0], [1], [0, 0, 1, 1], [], []>} : vector<16x16xbf16>, vector<16x512xbf16>, vector<16x512xf32> -> vector<16x512xf32>
    %47 = arith.addf %37, %46 : vector<16x512xf32>
    %c4 = arith.constant 4 : index
    %c0_31 = arith.constant 0 : index
    %c0_32 = arith.constant 0 : index
    %48 = vector.load %arg2[%c4, %c0_31, %c0_32] : memref<9x16x16xbf16, #tpu.memory_space<vmem>>, vector<1x16x16xbf16>
    %49 = vector.shape_cast %48 : vector<1x16x16xbf16> to vector<16x16xbf16>
    %50 = arith.truncf %4 : vector<16x512xf32> to vector<16x512xbf16>
    %cst_33 = arith.constant dense<0.000000e+00> : vector<16x512xf32>
    %51 = tpu.matmul %49, %50, %cst_33 {dimension_numbers = #tpu.dot_dimension_numbers<[1], [0], [0], [1], [0, 0, 1, 1], [], []>} : vector<16x16xbf16>, vector<16x512xbf16>, vector<16x512xf32> -> vector<16x512xf32>
    %52 = arith.addf %47, %51 : vector<16x512xf32>
    %c511_i32 = arith.constant 511 : i32
    %53 = tpu.dynamic_rotate %4 by %c511_i32 dim 1 : vector<16x512xf32>, i32 -> vector<16x512xf32>
    %c5 = arith.constant 5 : index
    %c0_34 = arith.constant 0 : index
    %c0_35 = arith.constant 0 : index
    %54 = vector.load %arg5[%c5, %c0_34, %c0_35] : memref<9x1x512xf32, #tpu.memory_space<vmem>>, vector<1x1x512xf32>
    %55 = vector.shape_cast %54 : vector<1x1x512xf32> to vector<1x512xf32>
    %56 = vector.broadcast %55 : vector<1x512xf32> to vector<16x512xf32>
    %57 = arith.mulf %53, %56 : vector<16x512xf32>
    %c5_36 = arith.constant 5 : index
    %c0_37 = arith.constant 0 : index
    %c0_38 = arith.constant 0 : index
    %58 = vector.load %arg2[%c5_36, %c0_37, %c0_38] : memref<9x16x16xbf16, #tpu.memory_space<vmem>>, vector<1x16x16xbf16>
    %59 = vector.shape_cast %58 : vector<1x16x16xbf16> to vector<16x16xbf16>
    %60 = arith.truncf %57 : vector<16x512xf32> to vector<16x512xbf16>
    %cst_39 = arith.constant dense<0.000000e+00> : vector<16x512xf32>
    %61 = tpu.matmul %59, %60, %cst_39 {dimension_numbers = #tpu.dot_dimension_numbers<[1], [0], [0], [1], [0, 0, 1, 1], [], []>} : vector<16x16xbf16>, vector<16x512xbf16>, vector<16x512xf32> -> vector<16x512xf32>
    %62 = arith.addf %52, %61 : vector<16x512xf32>
    %c497_i32 = arith.constant 497 : i32
    %63 = tpu.dynamic_rotate %4 by %c497_i32 dim 1 : vector<16x512xf32>, i32 -> vector<16x512xf32>
    %c6 = arith.constant 6 : index
    %c0_40 = arith.constant 0 : index
    %c0_41 = arith.constant 0 : index
    %64 = vector.load %arg5[%c6, %c0_40, %c0_41] : memref<9x1x512xf32, #tpu.memory_space<vmem>>, vector<1x1x512xf32>
    %65 = vector.shape_cast %64 : vector<1x1x512xf32> to vector<1x512xf32>
    %66 = vector.broadcast %65 : vector<1x512xf32> to vector<16x512xf32>
    %67 = arith.mulf %63, %66 : vector<16x512xf32>
    %c6_42 = arith.constant 6 : index
    %c0_43 = arith.constant 0 : index
    %c0_44 = arith.constant 0 : index
    %68 = vector.load %arg2[%c6_42, %c0_43, %c0_44] : memref<9x16x16xbf16, #tpu.memory_space<vmem>>, vector<1x16x16xbf16>
    %69 = vector.shape_cast %68 : vector<1x16x16xbf16> to vector<16x16xbf16>
    %70 = arith.truncf %67 : vector<16x512xf32> to vector<16x512xbf16>
    %cst_45 = arith.constant dense<0.000000e+00> : vector<16x512xf32>
    %71 = tpu.matmul %69, %70, %cst_45 {dimension_numbers = #tpu.dot_dimension_numbers<[1], [0], [0], [1], [0, 0, 1, 1], [], []>} : vector<16x16xbf16>, vector<16x512xbf16>, vector<16x512xf32> -> vector<16x512xf32>
    %72 = arith.addf %62, %71 : vector<16x512xf32>
    %c496_i32 = arith.constant 496 : i32
    %73 = tpu.dynamic_rotate %4 by %c496_i32 dim 1 : vector<16x512xf32>, i32 -> vector<16x512xf32>
    %c7 = arith.constant 7 : index
    %c0_46 = arith.constant 0 : index
    %c0_47 = arith.constant 0 : index
    %74 = vector.load %arg5[%c7, %c0_46, %c0_47] : memref<9x1x512xf32, #tpu.memory_space<vmem>>, vector<1x1x512xf32>
    %75 = vector.shape_cast %74 : vector<1x1x512xf32> to vector<1x512xf32>
    %76 = vector.broadcast %75 : vector<1x512xf32> to vector<16x512xf32>
    %77 = arith.mulf %73, %76 : vector<16x512xf32>
    %c7_48 = arith.constant 7 : index
    %c0_49 = arith.constant 0 : index
    %c0_50 = arith.constant 0 : index
    %78 = vector.load %arg2[%c7_48, %c0_49, %c0_50] : memref<9x16x16xbf16, #tpu.memory_space<vmem>>, vector<1x16x16xbf16>
    %79 = vector.shape_cast %78 : vector<1x16x16xbf16> to vector<16x16xbf16>
    %80 = arith.truncf %77 : vector<16x512xf32> to vector<16x512xbf16>
    %cst_51 = arith.constant dense<0.000000e+00> : vector<16x512xf32>
    %81 = tpu.matmul %79, %80, %cst_51 {dimension_numbers = #tpu.dot_dimension_numbers<[1], [0], [0], [1], [0, 0, 1, 1], [], []>} : vector<16x16xbf16>, vector<16x512xbf16>, vector<16x512xf32> -> vector<16x512xf32>
    %82 = arith.addf %72, %81 : vector<16x512xf32>
    %c495_i32 = arith.constant 495 : i32
    %83 = tpu.dynamic_rotate %4 by %c495_i32 dim 1 : vector<16x512xf32>, i32 -> vector<16x512xf32>
    %c8 = arith.constant 8 : index
    %c0_52 = arith.constant 0 : index
    %c0_53 = arith.constant 0 : index
    %84 = vector.load %arg5[%c8, %c0_52, %c0_53] : memref<9x1x512xf32, #tpu.memory_space<vmem>>, vector<1x1x512xf32>
    %85 = vector.shape_cast %84 : vector<1x1x512xf32> to vector<1x512xf32>
    %86 = vector.broadcast %85 : vector<1x512xf32> to vector<16x512xf32>
    %87 = arith.mulf %83, %86 : vector<16x512xf32>
    %c8_54 = arith.constant 8 : index
    %c0_55 = arith.constant 0 : index
    %c0_56 = arith.constant 0 : index
    %88 = vector.load %arg2[%c8_54, %c0_55, %c0_56] : memref<9x16x16xbf16, #tpu.memory_space<vmem>>, vector<1x16x16xbf16>
    %89 = vector.shape_cast %88 : vector<1x16x16xbf16> to vector<16x16xbf16>
    %90 = arith.truncf %87 : vector<16x512xf32> to vector<16x512xbf16>
    %cst_57 = arith.constant dense<0.000000e+00> : vector<16x512xf32>
    %91 = tpu.matmul %89, %90, %cst_57 {dimension_numbers = #tpu.dot_dimension_numbers<[1], [0], [0], [1], [0, 0, 1, 1], [], []>} : vector<16x16xbf16>, vector<16x512xbf16>, vector<16x512xf32> -> vector<16x512xf32>
    %92 = arith.addf %82, %91 : vector<16x512xf32>
    %c0_58 = arith.constant 0 : index
    %c0_59 = arith.constant 0 : index
    %93 = vector.load %arg4[%c0_58, %c0_59] : memref<8x4xf32, #tpu.memory_space<vmem>>, vector<8x4xf32>
    %94 = vector.extract_strided_slice %93 {offsets = [0, 0], sizes = [8, 2], strides = [1, 1]} : vector<8x4xf32> to vector<8x2xf32>
    %95 = vector.extract_strided_slice %93 {offsets = [0, 2], sizes = [8, 2], strides = [1, 1]} : vector<8x4xf32> to vector<8x2xf32>
    %96 = vector.extract_strided_slice %92 {offsets = [0, 0], sizes = [16, 256], strides = [1, 1]} : vector<16x512xf32> to vector<16x256xf32>
    %97 = vector.extract_strided_slice %96 {offsets = [0, 0], sizes = [8, 256], strides = [1, 1]} : vector<16x256xf32> to vector<8x256xf32>
    %98 = vector.extract_strided_slice %96 {offsets = [8, 0], sizes = [8, 256], strides = [1, 1]} : vector<16x256xf32> to vector<8x256xf32>
    %99 = arith.mulf %97, %97 : vector<8x256xf32>
    %100 = arith.mulf %98, %98 : vector<8x256xf32>
    %101 = arith.addf %99, %100 : vector<8x256xf32>
    %cst_60 = arith.constant dense<0.000000e+00> : vector<8xf32>
    %102 = vector.multi_reduction <add>, %101, %cst_60 [1] : vector<8x256xf32> to vector<8xf32>
    %103 = vector.shape_cast %102 : vector<8xf32> to vector<8x1xf32>
    %cst_61 = arith.constant 3.906250e-03 : f32
    %104 = vector.broadcast %cst_61 : f32 to vector<8x1xf32>
    %105 = arith.mulf %103, %104 : vector<8x1xf32>
    %106 = vector.broadcast %105 : vector<8x1xf32> to vector<8x2xf32>
    %107 = arith.mulf %106, %94 : vector<8x2xf32>
    %cst_62 = arith.constant dense<0.000000e+00> : vector<2xf32>
    %108 = vector.multi_reduction <add>, %107, %cst_62 [0] : vector<8x2xf32> to vector<2xf32>
    %109 = vector.shape_cast %108 : vector<2xf32> to vector<1x2xf32>
    %cst_63 = arith.constant 0.000000e+00 : f32
    %110 = vector.broadcast %cst_63 : f32 to vector<1x2xf32>
    %111 = arith.maximumf %109, %110 : vector<1x2xf32>
    %112 = vector.broadcast %111 : vector<1x2xf32> to vector<8x2xf32>
    %113 = arith.mulf %95, %112 : vector<8x2xf32>
    %cst_64 = arith.constant dense<0.000000e+00> : vector<8xf32>
    %114 = vector.multi_reduction <add>, %113, %cst_64 [1] : vector<8x2xf32> to vector<8xf32>
    %115 = vector.shape_cast %114 : vector<8xf32> to vector<8x1xf32>
    %116 = arith.negf %115 : vector<8x1xf32>
    %117 = math.exp %116 : vector<8x1xf32>
    %cst_65 = arith.constant 1.000000e+00 : f32
    %118 = vector.broadcast %cst_65 : f32 to vector<8x1xf32>
    %119 = arith.addf %118, %117 : vector<8x1xf32>
    %120 = arith.divf %118, %119 : vector<8x1xf32>
    %121 = tpu.concatenate %120, %120 in 0 : vector<8x1xf32>, vector<8x1xf32> -> vector<16x1xf32>
    %122 = vector.broadcast %121 : vector<16x1xf32> to vector<16x256xf32>
    %123 = arith.mulf %96, %122 : vector<16x256xf32>
    %124 = arith.addf %123, %1 : vector<16x256xf32>
    %c0_66 = arith.constant 0 : index
    %c0_67 = arith.constant 0 : index
    %c0_68 = arith.constant 0 : index
    %125 = vector.load %arg6[%c0_66, %c0_67, %c0_68] : memref<2x16x256xf32, #tpu.memory_space<vmem>>, vector<1x16x256xf32>
    %126 = vector.shape_cast %125 : vector<1x16x256xf32> to vector<16x256xf32>
    %127 = arith.addf %124, %126 : vector<16x256xf32>
    %c0_69 = arith.constant 0 : index
    %c0_70 = arith.constant 0 : index
    %c0_71 = arith.constant 0 : index
    %128 = vector.load %arg7[%c0_69, %c0_70, %c0_71] : memref<2x16x256xf32, #tpu.memory_space<vmem>>, vector<1x16x256xf32>
    %129 = vector.shape_cast %128 : vector<1x16x256xf32> to vector<16x256xf32>
    %130 = vector.shape_cast %127 : vector<16x256xf32> to vector<1x16x256xf32>
    tpu.vector_store %arg7[%c0_69, %c0_70, %c0_71], %130 {strides = array<i32>} : memref<2x16x256xf32, #tpu.memory_space<vmem>>, vector<1x16x256xf32>,
    %131 = vector.extract_strided_slice %92 {offsets = [0, 256], sizes = [16, 256], strides = [1, 1]} : vector<16x512xf32> to vector<16x256xf32>
    %132 = vector.extract_strided_slice %131 {offsets = [0, 0], sizes = [8, 256], strides = [1, 1]} : vector<16x256xf32> to vector<8x256xf32>
    %133 = vector.extract_strided_slice %131 {offsets = [8, 0], sizes = [8, 256], strides = [1, 1]} : vector<16x256xf32> to vector<8x256xf32>
    %134 = arith.mulf %132, %132 : vector<8x256xf32>
    %135 = arith.mulf %133, %133 : vector<8x256xf32>
    %136 = arith.addf %134, %135 : vector<8x256xf32>
    %cst_72 = arith.constant dense<0.000000e+00> : vector<8xf32>
    %137 = vector.multi_reduction <add>, %136, %cst_72 [1] : vector<8x256xf32> to vector<8xf32>
    %138 = vector.shape_cast %137 : vector<8xf32> to vector<8x1xf32>
    %cst_73 = arith.constant 3.906250e-03 : f32
    %139 = vector.broadcast %cst_73 : f32 to vector<8x1xf32>
    %140 = arith.mulf %138, %139 : vector<8x1xf32>
    %141 = vector.broadcast %140 : vector<8x1xf32> to vector<8x2xf32>
    %142 = arith.mulf %141, %94 : vector<8x2xf32>
    %cst_74 = arith.constant dense<0.000000e+00> : vector<2xf32>
    %143 = vector.multi_reduction <add>, %142, %cst_74 [0] : vector<8x2xf32> to vector<2xf32>
    %144 = vector.shape_cast %143 : vector<2xf32> to vector<1x2xf32>
    %cst_75 = arith.constant 0.000000e+00 : f32
    %145 = vector.broadcast %cst_75 : f32 to vector<1x2xf32>
    %146 = arith.maximumf %144, %145 : vector<1x2xf32>
    %147 = vector.broadcast %146 : vector<1x2xf32> to vector<8x2xf32>
    %148 = arith.mulf %95, %147 : vector<8x2xf32>
    %cst_76 = arith.constant dense<0.000000e+00> : vector<8xf32>
    %149 = vector.multi_reduction <add>, %148, %cst_76 [1] : vector<8x2xf32> to vector<8xf32>
    %150 = vector.shape_cast %149 : vector<8xf32> to vector<8x1xf32>
    %151 = arith.negf %150 : vector<8x1xf32>
    %152 = math.exp %151 : vector<8x1xf32>
    %cst_77 = arith.constant 1.000000e+00 : f32
    %153 = vector.broadcast %cst_77 : f32 to vector<8x1xf32>
    %154 = arith.addf %153, %152 : vector<8x1xf32>
    %155 = arith.divf %153, %154 : vector<8x1xf32>
    %156 = tpu.concatenate %155, %155 in 0 : vector<8x1xf32>, vector<8x1xf32> -> vector<16x1xf32>
    %157 = vector.broadcast %156 : vector<16x1xf32> to vector<16x256xf32>
    %158 = arith.mulf %131, %157 : vector<16x256xf32>
    %159 = arith.addf %158, %3 : vector<16x256xf32>
    %c1_78 = arith.constant 1 : index
    %c0_79 = arith.constant 0 : index
    %c0_80 = arith.constant 0 : index
    %160 = vector.load %arg6[%c1_78, %c0_79, %c0_80] : memref<2x16x256xf32, #tpu.memory_space<vmem>>, vector<1x16x256xf32>
    %161 = vector.shape_cast %160 : vector<1x16x256xf32> to vector<16x256xf32>
    %162 = arith.addf %159, %161 : vector<16x256xf32>
    %c1_81 = arith.constant 1 : index
    %c0_82 = arith.constant 0 : index
    %c0_83 = arith.constant 0 : index
    %163 = vector.load %arg7[%c1_81, %c0_82, %c0_83] : memref<2x16x256xf32, #tpu.memory_space<vmem>>, vector<1x16x256xf32>
    %164 = vector.shape_cast %163 : vector<1x16x256xf32> to vector<16x256xf32>
    %165 = vector.shape_cast %162 : vector<16x256xf32> to vector<1x16x256xf32>
    tpu.vector_store %arg7[%c1_81, %c0_82, %c0_83], %165 {strides = array<i32>} : memref<2x16x256xf32, #tpu.memory_space<vmem>>, vector<1x16x256xf32>,
    return
  }
  func.func @transform_0(%arg0: i32) -> (i32, i32, i32) {
    %c0_i32 = arith.constant 0 : i32
    %c0_i32_0 = arith.constant 0 : i32
    %c0_i32_1 = arith.constant 0 : i32
    return %arg0, %c0_i32, %c0_i32_0 : i32, i32, i32
  }
  func.func @transform_1(%arg0: i32) -> (i32, i32, i32) {
    %c0_i32 = arith.constant 0 : i32
    %c0_i32_0 = arith.constant 0 : i32
    %c0_i32_1 = arith.constant 0 : i32
    %c0_i32_2 = arith.constant 0 : i32
    return %c0_i32, %c0_i32_0, %c0_i32_1 : i32, i32, i32
  }
  func.func @transform_2(%arg0: i32) -> (i32, i32) {
    %c0_i32 = arith.constant 0 : i32
    %c0_i32_0 = arith.constant 0 : i32
    %c0_i32_1 = arith.constant 0 : i32
    return %c0_i32, %c0_i32_0 : i32, i32
  }
  func.func @transform_3(%arg0: i32) -> (i32, i32) {
    %c0_i32 = arith.constant 0 : i32
    %c0_i32_0 = arith.constant 0 : i32
    %c0_i32_1 = arith.constant 0 : i32
    return %c0_i32, %c0_i32_0 : i32, i32
  }
  func.func @transform_4(%arg0: i32) -> (i32, i32, i32) {
    %c0_i32 = arith.constant 0 : i32
    %c0_i32_0 = arith.constant 0 : i32
    %c0_i32_1 = arith.constant 0 : i32
    %c0_i32_2 = arith.constant 0 : i32
    return %c0_i32, %c0_i32_0, %c0_i32_1 : i32, i32, i32
  }
  func.func @transform_5(%arg0: i32) -> (i32, i32, i32) {
    %c0_i32 = arith.constant 0 : i32
    %c0_i32_0 = arith.constant 0 : i32
    %c0_i32_1 = arith.constant 0 : i32
    return %arg0, %c0_i32, %c0_i32_0 : i32, i32, i32
  }
  func.func @transform_6(%arg0: i32) -> (i32, i32, i32) {
    %c0_i32 = arith.constant 0 : i32
    %c0_i32_0 = arith.constant 0 : i32
    %c0_i32_1 = arith.constant 0 : i32
    return %arg0, %c0_i32, %c0_i32_0 : i32, i32, i32
  }
}

</mosaic_0001>

<bundles_post_ra>
// kernel: rcab_forward.2
= control target key start
LH: loop header
LB: loop body
LE: loop exit
PB: predicated region body
PF: predicated region fallthrough
CT: control target
= control target key end

     0   :  { %s584_s15 = smov 0   ;;  %s664_s0 = inlined_call_operand.vmem [shape: f32[4,16,256], index: 0, kind: input, shape index: {}]   ;;  %s665_s1 = inlined_call_operand.vmem [shape: bf16[1,16,16], index: 1, kind: input, shape index: {}]   ;;  %s666_s2 = inlined_call_operand.vmem [shape: f32[16,1], index: 2, kind: input, shape index: {}]   ;;  %s667_s3 = inlined_call_operand.vmem [shape: f32[8,4], index: 3, kind: input, shape index: {}]   ;;  %s668_s4 = inlined_call_operand.vmem [shape: f32[4,16,256], index: 4, kind: output, shape index: {}]  }
   0x1 LB: > { %s498_s16 = sadd.s32 4294967295, %s554_s15   ;;  %p502_p0 = scmp.ge.s32.totalorder %s554_s15, 1  ;;  %s554_s15 = sphi %s584_s15, %s14_s15  }
   0x2   : > { %p164_p1 = scmp.lt.s32.totalorder %s554_s15, 3 }
   0x4   : > { %p165_p2 = pnand %p502_p0, %p164_p1 }
   0x5   : > { %s503_s17 = sshll.u32 (!%p165_p2), %s498_s16, 1  ;;  %s557_s30 = smov (!%p165_p2), 2  }
   0x6   : > { %168 = sbr.rel (%p165_p2) target bundleno = 921 (0x399), region = 36  ;;  %p193_p3 = scmp.lt.s32.totalorder (!%p165_p2), %s503_s17, 3 }
   0x7   : > { %s558_s5 = smov (!%p165_p2), 126  }
   0xb   : > { %v556_v0 = vmov 0   ;;  %v216_v1 = vld [vmem:[%s666_s2] sm:$0xff]  ;;  %s670_s17 = smov (!%p193_p3, %s503_s17), 3  ;;  %v217_v2 = vld [vmem:[%s666_s2 + $0x8] sm:$0xff]  ;;  %vm239_vm0 = vcmask 130048   ;;  %vm349_vm1 = vcmask 15360  }
   0xc   : > { %275 = vmatprep.mubr.bf16.mxu0 %v556_v0  ;;  %318 = vmatprep.mubr.bf16.mxu1 %v556_v0  ;;  %s524_s22 = sshll.u32 %s670_s17, 5  ;;  %v539_v15 = vld [vmem:[%s665_s1] sm:$0xff]  }
   0xd   : > { %537 = vset.pattern.permute.xlu0 %v556_v0  ;;  %538 = vset.pattern.permute.xlu1 %v556_v0  ;;  %s197_s25 = scalar_lea.vmem %s664_s0, %s524_s22  ;;  %v337_v48 = vld [vmem:[%s667_s3] sm:$0xff]  ;;  %s204_s8 = scalar_lea.vmem %s668_s4, %s524_s22 }
   0xe   : > { %220 = vperm.xlu0 %537, %v216_v1   ;;  %v208_v3 = vld [vmem:[%s197_s25 + $0x8] sm:$0xff]  ;;  %v210_v4 = vld [vmem:[%s197_s25 + $0x18] sm:$0xff]  ;;  %v207_v8 = vld [vmem:[%s197_s25] sm:$0xff] }
   0xf   : > { %v510_v5 = vld [vmem:[%s197_s25 + $0x28] sm:$0xff]  ;;  %v231_v6 = vpack.c.bf16 %v210_v4, %v208_v3  ;;  %v512_v7 = vld [vmem:[%s197_s25 + $0x38] sm:$0xff]  ;;  %v209_v9 = vld [vmem:[%s197_s25 + $0x10] sm:$0xff] }
  0x10   : > { %v233_v10 = vpack.c.bf16 %v512_v7, %v510_v5  ;;  %v230_v11 = vpack.c.bf16 %v209_v9, %v207_v8  ;;  %v509_v12 = vld [vmem:[%s197_s25 + $0x20] sm:$0xff]  ;;  %v511_v13 = vld [vmem:[%s197_s25 + $0x30] sm:$0xff] }
  0x11   : > { %257 = vmatprep.subr.bf16.mxu0 %v231_v6  ;;  %v232_v14 = vpack.c.bf16 %v511_v13, %v509_v12 }
  0x12   : > { %225 = vperm.xlu0 %537, %v217_v2   ;;  %300 = vmatprep.subr.bf16.mxu1 %v233_v10 }
  0x13   : > { %258 = vmatpush1.bf16.msra.mxu0 %v230_v11  ;;  %301 = vmatpush1.bf16.msra.mxu1 %v232_v14 }
  0x16   : > { %514 = vmatmul.mubr.msk.bf16.vlgmr.msra.gmra.mxu0 %vm239_vm0, %v539_v15  ;;  %515 = vmatmul.mubr.msk.bf16.vlgmr.msra.gmra.mxu1 %vm239_vm0, %v539_v15 }
  0x89   : > { %v221_v16 = vpop.permute.xlu0 %220 }
  0x8d   : > { %v226_v21 = vpop.permute.xlu0 %225 }
  0xd6   : > { %v277_v17 = vpop.f32.mrf.mxu0  ;;  %v320_v18 = vpop.f32.mrf.mxu1 }
  0xd7   : > { %v609_v23 = vadd.f32 %v277_v17, %v221_v16  ;;  %v627_v35 = vadd.f32 %v320_v18, %v221_v16 }
  0xd8   : > { %v279_v19 = vpop.f32.mrf.mxu0  ;;  %v322_v20 = vpop.f32.mrf.mxu1 }
  0xd9   : > { %v611_v24 = vadd.f32 %v279_v19, %v221_v16  ;;  %v615_v28 = vadd.f32 %v322_v20, %v221_v16  ;;  %v338_v34 = vmul.f32 %v609_v23, %v609_v23  ;;  %v389_v43 = vmul.f32 %v627_v35, %v627_v35 }
  0xda   : > { %v281_v22 = vpop.f32.mrf.mxu0  ;;  %v324_v26 = vpop.f32.mrf.mxu1 }
  0xdb   : > { %v613_v25 = vadd.f32 %v281_v22, %v226_v21  ;;  %v619_v30 = vadd.f32 %v324_v26, %v226_v21  ;;  %v339_v36 = vmul.f32 %v611_v24, %v611_v24  ;;  %v390_v39 = vmul.f32 %v615_v28, %v615_v28 }
  0xdc   : > { %v283_v27 = vpop.f32.mrf.mxu0  ;;  %v326_v32 = vpop.f32.mrf.mxu1 }
  0xdd   : > { %v340_v29 = vmul.f32 %v613_v25, %v613_v25  ;;  %v621_v31 = vadd.f32 %v283_v27, %v226_v21  ;;  %v623_v33 = vadd.f32 %v326_v32, %v226_v21  ;;  %v391_v40 = vmul.f32 %v619_v30, %v619_v30 }
  0xdf   : > { %v341_v37 = vmul.f32 %v621_v31, %v621_v31  ;;  %v392_v38 = vmul.f32 %v623_v33, %v623_v33  ;;  %v342_v41 = vadd.f32 %v340_v29, %v338_v34  ;;  %v393_v46 = vadd.f32 %v391_v40, %v389_v43 }
  0xe1   : > { %v343_v42 = vadd.f32 %v341_v37, %v339_v36  ;;  %v394_v45 = vadd.f32 %v392_v38, %v390_v39 }
  0xe3   : > { %v344_v44 = vadd.f32 %v343_v42, %v342_v41  ;;  %v395_v47 = vadd.f32 %v394_v45, %v393_v46 }
  0xe5   : > { %345 = vadd.xlane.f32.xlu1 %v344_v44 }
  0xe9   : > { %396 = vadd.xlane.f32.xlu1 %v395_v47 }
 0x16e   : > { %v346_v49 = vpop.xlane.xlu1 %345 }
 0x16f   : > { %v347_v50 = vmul.f32 0.00390625, %v346_v49 }
 0x171   : > { %v348_v51 = vmul.f32 %v347_v50, %v337_v48 }
 0x172   : > { %v397_v52 = vpop.xlane.xlu1 %396 }
 0x173   : > { %v350_v53 = vsel %vm349_vm1, %v348_v51, 0.0  ;;  %v398_v54 = vmul.f32 0.00390625, %v397_v52 }
 0x174   : > { %v351_v55 = vrot.slane %v350_v53, 4 }
 0x175   : > { %v399_v56 = vmul.f32 %v398_v54, %v337_v48 }
 0x176   : > { %v352_v57 = vadd.f32 %v351_v55, %v350_v53 }
 0x177   : > { %v400_v58 = vsel %vm349_vm1, %v399_v56, 0.0 }
 0x178   : > { %v353_v59 = vrot.slane %v352_v57, 2  ;;  %v401_v60 = vrot.slane %v400_v58, 4 }
 0x17a   : > { %v402_v61 = vadd.f32 %v401_v60, %v400_v58  ;;  %v354_v62 = vadd.f32 %v353_v59, %v352_v57 }
 0x17c   : > { %v403_v63 = vrot.slane %v402_v61, 2  ;;  %v355_v0 = vrot.slane %v354_v62, 1 }
 0x17e   : > { %v356_v1 = vadd.f32 %v355_v0, %v354_v62  ;;  %v404_v2 = vadd.f32 %v403_v63, %v402_v61 }
 0x180   : > { %v357_v3 = vmax.f32 %v356_v1, 0.0  ;;  %v405_v4 = vrot.slane %v404_v2, 1 }
 0x182   : > { %359 = vrot.lane.b32.xlu0 %v357_v3, %s557_s30  ;;  %v406_v5 = vadd.f32 %v405_v4, %v404_v2 }
 0x184   : > { %v407_v6 = vmax.f32 %v406_v5, 0.0 }
 0x186   : > { %409 = vrot.lane.b32.xlu1 %v407_v6, %s557_s30 }
 0x1f4   : > { %v360_v7 = vpop.permute.xlu0 %359 }
 0x1f5   : > { %v362_v8 = vmul.f32 %v360_v7, %v337_v48 }
 0x1f7   : > { %364 = vrot.lane.b32.xlu0 %v362_v8, %s558_s5 }
 0x1f8   : > { %v410_v9 = vpop.permute.xlu1 %409 }
 0x1f9   : > { %v412_v10 = vmul.f32 %v410_v9, %v337_v48 }
 0x1fb   : > { %414 = vrot.lane.b32.xlu0 %v412_v10, %s558_s5 }
 0x269   : > { %v365_v11 = vpop.permute.xlu0 %364 }
 0x26a   : > { %v367_v12 = vsel %vm349_vm1, %v365_v11, 0.0 }
 0x26b   : > { %368 = vadd.xlane.f32.xlu0 %v367_v12 }
 0x26d   : > { %v415_v13 = vpop.permute.xlu0 %414 }
 0x26e   : > { %v417_v14 = vsel %vm349_vm1, %v415_v13, 0.0 }
 0x26f   : > { %418 = vadd.xlane.f32.xlu1 %v417_v14 }
 0x2f4   : > { %v369_v15 = vpop.xlane.xlu0 %368 }
 0x2f5   : > { %v516_v16 = vmul.f32 -1.442695, %v369_v15 }
 0x2f7   : > { %540 = vpow2.f32 %v516_v16 }
 0x2f8   : > { %v419_v17 = vpop.xlane.xlu1 %418 }
 0x2f9   : > { %v517_v18 = vmul.f32 -1.442695, %v419_v17 }
 0x2fb   : > { %542 = vpow2.f32 %v517_v18 }
 0x304   : > { %v541_v19 = vpop.eup %540 }
 0x305   : > { %v373_v20 = vadd.f32 1.0, %v541_v19 }
 0x307   : > { %544 = vrcp.f32 %v373_v20 }
 0x308   : > { %v543_v21 = vpop.eup %542 }
 0x309   : > { %v423_v22 = vadd.f32 1.0, %v543_v21 }
 0x30b   : > { %546 = vrcp.f32 %v423_v22 }
 0x314   : > { %v545_v26 = vpop.eup %544 }
 0x315   : > { %378 = vperm.xlu0 %537, %v545_v26  }
 0x318   : > { %v547_v27 = vpop.eup %546 }
 0x319   : > { %428 = vperm.xlu1 %538, %v547_v27  }
 0x390   : > { %v379_v29 = vpop.permute.xlu0 %378 }
 0x391   : > { %v381_v32 = vmul.f32 %v379_v29, %v609_v23  ;;  %v382_v34 = vmul.f32 %v379_v29, %v611_v24  ;;  %v383_v36 = vmul.f32 %v379_v29, %v613_v25  ;;  %v384_v37 = vmul.f32 %v379_v29, %v621_v31 }
 0x393   : > { %385 = vst [vmem:[%s204_s8] sm:$0xff] %v381_v32  ;;  %386 = vst [vmem:[%s204_s8 + $0x8] sm:$0xff] %v382_v34 }
 0x394   : > { %387 = vst [vmem:[%s204_s8 + $0x10] sm:$0xff] %v383_v36  ;;  %388 = vst [vmem:[%s204_s8 + $0x18] sm:$0xff] %v384_v37  ;;  %v429_v38 = vpop.permute.xlu1 %428 }
 0x395   : > { %v431_v39 = vmul.f32 %v429_v38, %v627_v35  ;;  %v432_v40 = vmul.f32 %v429_v38, %v615_v28  ;;  %v433_v41 = vmul.f32 %v429_v38, %v619_v30  ;;  %v434_v42 = vmul.f32 %v429_v38, %v623_v33 }
 0x397   : > { %518 = vst [vmem:[%s204_s8 + $0x20] sm:$0xff] %v431_v39  ;;  %519 = vst [vmem:[%s204_s8 + $0x28] sm:$0xff] %v432_v40 }
 0x398   : > { %520 = vst [vmem:[%s204_s8 + $0x30] sm:$0xff] %v433_v41  ;;  %521 = vst [vmem:[%s204_s8 + $0x38] sm:$0xff] %v434_v42 }
 0x399 PF: > { %s14_s15 = sadd.s32 1, %s554_s15  }
 0x39a   : > { %p11_p4 = scmp.ge.s32.totalorder %s14_s15, 4  }
 0x39c   :  { %13 = sbr.rel (!%p11_p4) target bundleno = 1 (0x1), region = 68 }

// kernel: rcab_forward.3
= control target key start
LH: loop header
LB: loop body
LE: loop exit
PB: predicated region body
PF: predicated region fallthrough
CT: control target
= control target key end

     0   :  { %s2118_s21 = smov 0   ;;  %s2667_s0 = inlined_call_operand.vmem [shape: f32[4,16,256], index: 0, kind: input, shape index: {}]   ;;  %s2668_s1 = inlined_call_operand.vmem [shape: bf16[9,16,16], index: 1, kind: input, shape index: {}]   ;;  %s2669_s2 = inlined_call_operand.vmem [shape: f32[16,1], index: 2, kind: input, shape index: {}]   ;;  %s2670_s3 = inlined_call_operand.vmem [shape: f32[8,4], index: 3, kind: input, shape index: {}]   ;;  %s2671_s4 = inlined_call_operand.vmem [shape: f32[9,1,512], index: 4, kind: input, shape index: {}]   ;;  %s2672_s5 = inlined_call_operand.vmem [shape: f32[4,16,256], index: 5, kind: input, shape index: {}]   ;;  %s2673_s6 = inlined_call_operand.vmem [shape: f32[4,16,256], index: 6, kind: output, shape index: {}]  }
   0x1 LB: > { %s1935_s22 = sadd.s32 4294967295, %s2070_s21   ;;  %p1939_p0 = scmp.ge.s32.totalorder %s2070_s21, 1  ;;  %s2070_s21 = sphi %s2118_s21, %s16_s21  }
   0x2   : > { %p226_p1 = scmp.lt.s32.totalorder %s2070_s21, 3 }
   0x4   : > { %p227_p2 = pnand %p1939_p0, %p226_p1 }
   0x6   : > { %230 = sbr.rel (%p227_p2) target bundleno = 1165 (0x48d), region = 44 }
   0xb   : > { %s1940_s23 = sshll.u32 %s1935_s22, 1  ;;  %s2072_s28 = smov 17   ;;  %v2074_v8 = vmov 0   ;;  %v323_v9 = vlaneseq  ;;  %v334_v13 = vld [vmem:[%s2671_s4] sm:$0xf]  ;;  %v296_v34 = vld [vmem:[%s2669_s2 + $0x8] sm:$0xff] }
   0xc   : > { %p265_p3 = scmp.lt.s32.totalorder %s1940_s23, 3  ;;  %s2073_s29 = smov 16   ;;  %411 = vmatprep.mubr.bf16.mxu0 %v2074_v8  ;;  %454 = vmatprep.mubr.bf16.mxu1 %v2074_v8  ;;  %v295_v39 = vld [vmem:[%s2669_s2] sm:$0xff]  ;;  %vm375_vm2 = vcmask 130048   ;;  %vm1749_vm9 = vcmask 15360  }
   0xd   : > { %2038 = vset.pattern.permute.xlu1 %v2074_v8  ;;  %2037 = vset.pattern.permute.xlu0 %v2074_v8  ;;  %s2075_s30 = smov 15   ;;  %s2076_s7 = smov 1   ;;  %v337_v10 = vshrl.u32 %v323_v9, 7  ;;  %v2218_v11 = vand.u32 127, %v323_v9  ;;  %v1956_v48 = vld [vmem:[%s2671_s4 + $0x4] sm:$0xf] }
   0xe   : > { %s2689_s23 = smov (!%p265_p3, %s1940_s23), 3  ;;  %s2077_s8 = smov 127   ;;  %v2039_v54 = vld [vmem:[%s2668_s1] sm:$0xff]  }
   0xf   : > { %s2126_s24 = sshll.u32 %s2689_s23, 5  ;;  %s2078_s9 = smov 113   ;;  %v2222_v12 = vsub.s32 1, %v337_v10  ;;  %vm325_vm0 = vcmp.lt.s32.totalorder %v2218_v11, 17  ;;  %v2233_v20 = vsub.s32 2, %v337_v10  ;;  %v2239_v24 = vsub.s32 0, %v337_v10 }
  0x10   : > { %s2132_s27 = scalar_lea.vmem %s2667_s0, %s2126_s24  ;;  %s2079_s10 = smov 112   ;;  %v2241_v25 = vsub.s32 3, %v337_v10  ;;  %vm489_vm1 = vcmp.lt.s32.totalorder %v2218_v11, 16  ;;  %vm654_vm3 = vcmp.lt.s32.totalorder %v2218_v11, 15  ;;  %vm819_vm4 = vcmp.lt.s32.totalorder %v2218_v11, 1 }
  0x11   : > { %v2135_v0 = vld [vmem:[%s2132_s27 + $0x8] sm:$0xff]  ;;  %v2138_v1 = vld [vmem:[%s2132_s27] sm:$0xff]  ;;  %v2143_v2 = vld [vmem:[%s2132_s27 + $0x18] sm:$0xff]  ;;  %s2080_s11 = smov 111   ;;  %v343_v16 = vrot.slane %v334_v13, %v2222_v12  ;;  %v347_v26 = vrot.slane %v334_v13, %v2233_v20  ;;  %v339_v32 = vrot.slane %v334_v13, %v2239_v24  ;;  %v508_v55 = vrot.slane %v1956_v48, %v2222_v12  ;;  %s2624_s14 = scalar_lea.vmem %s2672_s5, %s2126_s24 }
  0x12   : > { %311 = vrot.lane.b32.xlu1 %v2135_v0, %s2072_s28  ;;  %307 = vrot.lane.b32.xlu0 %v2138_v1, %s2072_s28  ;;  %v2146_v3 = vld [vmem:[%s2132_s27 + $0x10] sm:$0xff]  ;;  %v2154_v5 = vld [vmem:[%s2132_s27 + $0x20] sm:$0xff]  ;;  %v351_v33 = vrot.slane %v334_v13, %v2241_v25  ;;  %v512_v62 = vrot.slane %v1956_v48, %v2233_v20  ;;  %vm1093_vm5 = vcmp.lt.s32.totalorder %v2218_v11, 127  ;;  %vm1258_vm6 = vcmp.lt.s32.totalorder %v2218_v11, 113  ;;  %s2642_s17 = scalar_lea.vmem %s2673_s6, %s2126_s24 }
  0x13   : > { %v2151_v4 = vld [vmem:[%s2132_s27 + $0x30] sm:$0xff]  ;;  %v2159_v6 = vld [vmem:[%s2132_s27 + $0x38] sm:$0xff]  ;;  %v2162_v7 = vld [vmem:[%s2132_s27 + $0x28] sm:$0xff]  ;;  %vm1423_vm7 = vcmp.lt.s32.totalorder %v2218_v11, 112  ;;  %vm1588_vm8 = vcmp.lt.s32.totalorder %v2218_v11, 111 }
  0x16   : > { %313 = vrot.lane.b32.xlu1 %v2143_v2, %s2072_s28  ;;  %309 = vrot.lane.b32.xlu0 %v2146_v3, %s2072_s28 }
  0x1a   : > { %317 = vrot.lane.b32.xlu1 %v2151_v4, %s2072_s28  ;;  %315 = vrot.lane.b32.xlu0 %v2154_v5, %s2072_s28 }
  0x1e   : > { %321 = vrot.lane.b32.xlu1 %v2159_v6, %s2072_s28  ;;  %319 = vrot.lane.b32.xlu0 %v2162_v7, %s2072_s28 }
  0x22   : > { %475 = vrot.lane.b32.xlu1 %v2146_v3, %s2073_s29  ;;  %473 = vrot.lane.b32.xlu0 %v2138_v1, %s2073_s29 }
  0x26   : > { %479 = vrot.lane.b32.xlu1 %v2143_v2, %s2073_s29  ;;  %477 = vrot.lane.b32.xlu0 %v2135_v0, %s2073_s29 }
  0x2a   : > { %483 = vrot.lane.b32.xlu1 %v2151_v4, %s2073_s29  ;;  %481 = vrot.lane.b32.xlu0 %v2154_v5, %s2073_s29 }
  0x2e   : > { %487 = vrot.lane.b32.xlu1 %v2159_v6, %s2073_s29  ;;  %485 = vrot.lane.b32.xlu0 %v2162_v7, %s2073_s29 }
  0x32   : > { %640 = vrot.lane.b32.xlu1 %v2146_v3, %s2075_s30  ;;  %638 = vrot.lane.b32.xlu0 %v2138_v1, %s2075_s30 }
  0x36   : > { %644 = vrot.lane.b32.xlu1 %v2143_v2, %s2075_s30  ;;  %642 = vrot.lane.b32.xlu0 %v2135_v0, %s2075_s30 }
  0x3a   : > { %648 = vrot.lane.b32.xlu1 %v2151_v4, %s2075_s30  ;;  %646 = vrot.lane.b32.xlu0 %v2154_v5, %s2075_s30 }
  0x3e   : > { %652 = vrot.lane.b32.xlu1 %v2159_v6, %s2075_s30  ;;  %650 = vrot.lane.b32.xlu0 %v2162_v7, %s2075_s30 }
  0x42   : > { %805 = vrot.lane.b32.xlu1 %v2146_v3, %s2076_s7  ;;  %803 = vrot.lane.b32.xlu0 %v2138_v1, %s2076_s7 }
  0x46   : > { %809 = vrot.lane.b32.xlu1 %v2143_v2, %s2076_s7  ;;  %807 = vrot.lane.b32.xlu0 %v2135_v0, %s2076_s7 }
  0x4a   : > { %813 = vrot.lane.b32.xlu1 %v2151_v4, %s2076_s7  ;;  %811 = vrot.lane.b32.xlu0 %v2154_v5, %s2076_s7 }
  0x4e   : > { %817 = vrot.lane.b32.xlu1 %v2159_v6, %s2076_s7  ;;  %815 = vrot.lane.b32.xlu0 %v2162_v7, %s2076_s7 }
  0x52   : > { %1083 = vrot.lane.b32.xlu1 %v2143_v2, %s2077_s8  ;;  %1081 = vrot.lane.b32.xlu0 %v2135_v0, %s2077_s8 }
  0x56   : > { %1087 = vrot.lane.b32.xlu1 %v2151_v4, %s2077_s8  ;;  %1085 = vrot.lane.b32.xlu0 %v2154_v5, %s2077_s8 }
  0x5a   : > { %1079 = vrot.lane.b32.xlu1 %v2146_v3, %s2077_s8  ;;  %1077 = vrot.lane.b32.xlu0 %v2138_v1, %s2077_s8 }
  0x5e   : > { %1091 = vrot.lane.b32.xlu1 %v2159_v6, %s2077_s8  ;;  %1089 = vrot.lane.b32.xlu0 %v2162_v7, %s2077_s8 }
  0x62   : > { %1248 = vrot.lane.b32.xlu1 %v2143_v2, %s2078_s9  ;;  %1246 = vrot.lane.b32.xlu0 %v2135_v0, %s2078_s9 }
  0x66   : > { %1252 = vrot.lane.b32.xlu1 %v2151_v4, %s2078_s9  ;;  %1250 = vrot.lane.b32.xlu0 %v2154_v5, %s2078_s9 }
  0x6a   : > { %1244 = vrot.lane.b32.xlu1 %v2146_v3, %s2078_s9  ;;  %1242 = vrot.lane.b32.xlu0 %v2138_v1, %s2078_s9 }
  0x6e   : > { %1256 = vrot.lane.b32.xlu1 %v2159_v6, %s2078_s9  ;;  %1254 = vrot.lane.b32.xlu0 %v2162_v7, %s2078_s9 }
  0x72   : > { %1413 = vrot.lane.b32.xlu1 %v2143_v2, %s2079_s10  ;;  %1411 = vrot.lane.b32.xlu0 %v2135_v0, %s2079_s10 }
  0x76   : > { %1417 = vrot.lane.b32.xlu1 %v2151_v4, %s2079_s10  ;;  %1415 = vrot.lane.b32.xlu0 %v2154_v5, %s2079_s10 }
  0x7a   : > { %1409 = vrot.lane.b32.xlu1 %v2146_v3, %s2079_s10  ;;  %1407 = vrot.lane.b32.xlu0 %v2138_v1, %s2079_s10 }
  0x7e   : > { %1421 = vrot.lane.b32.xlu1 %v2159_v6, %s2079_s10  ;;  %1419 = vrot.lane.b32.xlu0 %v2162_v7, %s2079_s10  ;;  %s2081_s10 = smov 2  }
  0x82   : > { %1578 = vrot.lane.b32.xlu1 %v2143_v2, %s2080_s11  ;;  %1576 = vrot.lane.b32.xlu0 %v2135_v0, %s2080_s11 }
  0x84   : > { %v312_v14 = vpop.permute.xlu1 %311  ;;  %v308_v15 = vpop.permute.xlu0 %307 }
  0x85   : > { %v330_v17 = vsel %vm325_vm0, %v308_v15, %v312_v14 }
  0x86   : > { %1582 = vrot.lane.b32.xlu1 %v2151_v4, %s2080_s11  ;;  %1580 = vrot.lane.b32.xlu0 %v2154_v5, %s2080_s11  ;;  %v357_v22 = vmul.f32 %v343_v16, %v330_v17 }
  0x88   : > { %v314_v18 = vpop.permute.xlu1 %313  ;;  %v310_v19 = vpop.permute.xlu0 %309 }
  0x89   : > { %v331_v21 = vsel %vm325_vm0, %v310_v19, %v314_v18 }
  0x8a   : > { %1574 = vrot.lane.b32.xlu1 %v2146_v3, %s2080_s11  ;;  %1572 = vrot.lane.b32.xlu0 %v2138_v1, %s2080_s11  ;;  %v361_v23 = vmul.f32 %v343_v16, %v331_v21  ;;  %v516_v16 = vrot.slane %v1956_v48, %v2241_v25 }
  0x8c   : > { %v318_v27 = vpop.permute.xlu1 %317  ;;  %v316_v28 = vpop.permute.xlu0 %315  ;;  %v367_v29 = vpack.c.bf16 %v361_v23, %v357_v22 }
  0x8d   : > { %v329_v30 = vsel %vm325_vm0, %v314_v18, %v318_v27  ;;  %v328_v31 = vsel %vm325_vm0, %v312_v14, %v316_v28 }
  0x8e   : > { %1586 = vrot.lane.b32.xlu1 %v2159_v6, %s2080_s11  ;;  %1584 = vrot.lane.b32.xlu0 %v2162_v7, %s2080_s11  ;;  %v362_v35 = vmul.f32 %v347_v26, %v329_v30  ;;  %v358_v36 = vmul.f32 %v347_v26, %v328_v31  ;;  %s2082_s11 = smov 126  }
  0x8f   : > { %393 = vmatprep.subr.bf16.mxu0 %v367_v29 }
  0x90   : > { %v322_v37 = vpop.permute.xlu1 %321  ;;  %v320_v38 = vpop.permute.xlu0 %319  ;;  %v368_v53 = vpack.c.bf16 %v362_v35, %v358_v36 }
  0x91   : > { %v327_v40 = vsel %vm325_vm0, %v318_v27, %v322_v37  ;;  %v333_v41 = vsel %vm325_vm0, %v322_v37, %v310_v19  ;;  %v326_v42 = vsel %vm325_vm0, %v316_v28, %v320_v38  ;;  %v332_v43 = vsel %vm325_vm0, %v320_v38, %v308_v15  ;;  %v2040_v38 = vld [vmem:[%s2668_s1 + $0x8] sm:$0xff]  }
  0x92   : > { %v360_v44 = vmul.f32 %v339_v32, %v333_v41  ;;  %v356_v45 = vmul.f32 %v339_v32, %v332_v43  ;;  %v359_v46 = vmul.f32 %v351_v33, %v326_v42  ;;  %v363_v47 = vmul.f32 %v351_v33, %v327_v40  ;;  %304 = vperm.xlu1 %2038, %v296_v34   ;;  %v1962_v32 = vld [vmem:[%s2671_s4 + $0x8] sm:$0xf] }
  0x93   : > { %299 = vperm.xlu0 %2037, %v295_v39   ;;  %v504_v15 = vrot.slane %v1956_v48, %v2239_v24  ;;  %v673_v39 = vrot.slane %v1962_v32, %v2222_v12 }
  0x94   : > { %v476_v49 = vpop.permute.xlu1 %475  ;;  %v474_v50 = vpop.permute.xlu0 %473  ;;  %v366_v51 = vpack.c.bf16 %v360_v44, %v356_v45  ;;  %v369_v52 = vpack.c.bf16 %v363_v47, %v359_v46  ;;  %v677_v46 = vrot.slane %v1962_v32, %v2233_v20 }
  0x96   : > { %394 = vmatpush1.bf16.msra.mxu0 %v366_v51  ;;  %436 = vmatprep.subr.bf16.mxu1 %v369_v52  ;;  %v669_v52 = vrot.slane %v1962_v32, %v2239_v24 }
  0x97   : > { %437 = vmatpush1.bf16.msra.mxu1 %v368_v53  ;;  %v681_v53 = vrot.slane %v1962_v32, %v2241_v25 }
  0x98   : > { %v480_v56 = vpop.permute.xlu1 %479  ;;  %v478_v57 = vpop.permute.xlu0 %477 }
  0x99   : > { %v495_v58 = vsel %vm489_vm1, %v476_v49, %v480_v56  ;;  %v494_v59 = vsel %vm489_vm1, %v474_v50, %v478_v57  ;;  %1954 = vmatmul.mubr.msk.bf16.vlgmr.msra.gmra.mxu0 %vm375_vm2, %v2039_v54 }
  0x9a   : > { %v526_v60 = vmul.f32 %v508_v55, %v495_v58  ;;  %v522_v61 = vmul.f32 %v508_v55, %v494_v59  ;;  %1955 = vmatmul.mubr.msk.bf16.vlgmr.msra.gmra.mxu1 %vm375_vm2, %v2039_v54  ;;  %576 = vmatprep.mubr.bf16.mxu0 %v2074_v8 }
  0x9b   : > { %619 = vmatprep.mubr.bf16.mxu1 %v2074_v8 }
  0x9c   : > { %v484_v63 = vpop.permute.xlu1 %483  ;;  %v482_v9 = vpop.permute.xlu0 %481  ;;  %v533_v10 = vpack.c.bf16 %v526_v60, %v522_v61 }
  0x9d   : > { %v493_v13 = vsel %vm489_vm1, %v480_v56, %v484_v63  ;;  %v492_v14 = vsel %vm489_vm1, %v478_v57, %v482_v9 }
  0x9e   : > { %558 = vmatprep.subr.bf16.mxu0 %v533_v10  ;;  %v527_v17 = vmul.f32 %v512_v62, %v493_v13  ;;  %v523_v18 = vmul.f32 %v512_v62, %v492_v14  ;;  %v1968_v13 = vld [vmem:[%s2671_s4 + $0xc] sm:$0xf] }
  0xa0   : > { %v488_v19 = vpop.permute.xlu1 %487  ;;  %v486_v21 = vpop.permute.xlu0 %485  ;;  %v534_v37 = vpack.c.bf16 %v527_v17, %v523_v18 }
  0xa1   : > { %v491_v22 = vsel %vm489_vm1, %v484_v63, %v488_v19  ;;  %v497_v23 = vsel %vm489_vm1, %v488_v19, %v476_v49  ;;  %v490_v26 = vsel %vm489_vm1, %v482_v9, %v486_v21  ;;  %v496_v27 = vsel %vm489_vm1, %v486_v21, %v474_v50  ;;  %v2041_v19 = vld [vmem:[%s2668_s1 + $0x10] sm:$0xff]  }
  0xa2   : > { %v525_v28 = vmul.f32 %v504_v15, %v497_v23  ;;  %v528_v29 = vmul.f32 %v516_v16, %v491_v22  ;;  %v521_v30 = vmul.f32 %v504_v15, %v496_v27  ;;  %v524_v31 = vmul.f32 %v516_v16, %v490_v26 }
  0xa3   : > { %v838_v21 = vrot.slane %v1968_v13, %v2222_v12 }
  0xa4   : > { %v532_v33 = vpack.c.bf16 %v525_v28, %v521_v30  ;;  %v641_v34 = vpop.permute.xlu1 %640  ;;  %v639_v35 = vpop.permute.xlu0 %638  ;;  %v535_v36 = vpack.c.bf16 %v528_v29, %v524_v31  ;;  %v842_v30 = vrot.slane %v1968_v13, %v2233_v20 }
  0xa6   : > { %559 = vmatpush1.bf16.msra.mxu0 %v532_v33  ;;  %601 = vmatprep.subr.bf16.mxu1 %v535_v36  ;;  %v834_v36 = vrot.slane %v1968_v13, %v2239_v24 }
  0xa7   : > { %602 = vmatpush1.bf16.msra.mxu1 %v534_v37  ;;  %v846_v37 = vrot.slane %v1968_v13, %v2241_v25  ;;  %v2043_v13 = vld [vmem:[%s2668_s1 + $0x20] sm:$0xff]  }
  0xa8   : > { %v645_v40 = vpop.permute.xlu1 %644  ;;  %v643_v41 = vpop.permute.xlu0 %642 }
  0xa9   : > { %v660_v42 = vsel %vm654_vm3, %v641_v34, %v645_v40  ;;  %v659_v43 = vsel %vm654_vm3, %v639_v35, %v643_v41  ;;  %1960 = vmatmul.mubr.msk.bf16.vlgmr.msra.gmra.mxu0 %vm375_vm2, %v2040_v38 }
  0xaa   : > { %v691_v44 = vmul.f32 %v673_v39, %v660_v42  ;;  %v687_v45 = vmul.f32 %v673_v39, %v659_v43  ;;  %1961 = vmatmul.mubr.msk.bf16.vlgmr.msra.gmra.mxu1 %vm375_vm2, %v2040_v38  ;;  %741 = vmatprep.mubr.bf16.mxu0 %v2074_v8 }
  0xab   : > { %784 = vmatprep.mubr.bf16.mxu1 %v2074_v8 }
  0xac   : > { %v649_v47 = vpop.permute.xlu1 %648  ;;  %v647_v48 = vpop.permute.xlu0 %646  ;;  %v698_v49 = vpack.c.bf16 %v691_v44, %v687_v45 }
  0xad   : > { %v658_v50 = vsel %vm654_vm3, %v645_v40, %v649_v47  ;;  %v657_v51 = vsel %vm654_vm3, %v643_v41, %v647_v48 }
  0xae   : > { %723 = vmatprep.subr.bf16.mxu0 %v698_v49  ;;  %v692_v54 = vmul.f32 %v677_v46, %v658_v50  ;;  %v688_v55 = vmul.f32 %v677_v46, %v657_v51  ;;  %v1979_v50 = vld [vmem:[%s2671_s4 + $0x14] sm:$0xf]  ;;  %v972_v51 = vpack.c.bf16 %v2143_v2, %v2135_v0  ;;  %v971_v0 = vpack.c.bf16 %v2146_v3, %v2138_v1 }
  0xaf   : > { %v973_v2 = vpack.c.bf16 %v2151_v4, %v2154_v5  ;;  %v1108_v1 = vrot.slane %v1979_v50, %v2239_v24 }
  0xb0   : > { %v653_v56 = vpop.permute.xlu1 %652  ;;  %v651_v57 = vpop.permute.xlu0 %650  ;;  %v699_v18 = vpack.c.bf16 %v692_v54, %v688_v55 }
  0xb1   : > { %v656_v58 = vsel %vm654_vm3, %v649_v47, %v653_v56  ;;  %v662_v59 = vsel %vm654_vm3, %v653_v56, %v641_v34  ;;  %v655_v60 = vsel %vm654_vm3, %v647_v48, %v651_v57  ;;  %v661_v61 = vsel %vm654_vm3, %v651_v57, %v639_v35 }
  0xb2   : > { %v690_v62 = vmul.f32 %v669_v52, %v662_v59  ;;  %v693_v63 = vmul.f32 %v681_v53, %v656_v58  ;;  %v686_v9 = vmul.f32 %v669_v52, %v661_v61  ;;  %v689_v10 = vmul.f32 %v681_v53, %v655_v60  ;;  %v2042_v58 = vld [vmem:[%s2668_s1 + $0x18] sm:$0xff]  }
  0xb3   : > { %v974_v56 = vpack.c.bf16 %v2159_v6, %v2162_v7  ;;  %v1112_v59 = vrot.slane %v1979_v50, %v2222_v12 }
  0xb4   : > { %v697_v14 = vpack.c.bf16 %v690_v62, %v686_v9  ;;  %v806_v15 = vpop.permute.xlu1 %805  ;;  %v804_v16 = vpop.permute.xlu0 %803  ;;  %v700_v17 = vpack.c.bf16 %v693_v63, %v689_v10 }
  0xb6   : > { %724 = vmatpush1.bf16.msra.mxu0 %v697_v14  ;;  %766 = vmatprep.subr.bf16.mxu1 %v700_v17  ;;  %v1120_v17 = vrot.slane %v1979_v50, %v2241_v25 }
  0xb7   : > { %767 = vmatpush1.bf16.msra.mxu1 %v699_v18 }
  0xb8   : > { %v810_v22 = vpop.permute.xlu1 %809  ;;  %v808_v23 = vpop.permute.xlu0 %807 }
  0xb9   : > { %v825_v26 = vsel %vm819_vm4, %v806_v15, %v810_v22  ;;  %v824_v27 = vsel %vm819_vm4, %v804_v16, %v808_v23  ;;  %1966 = vmatmul.mubr.msk.bf16.vlgmr.msra.gmra.mxu0 %vm375_vm2, %v2041_v19 }
  0xba   : > { %v856_v28 = vmul.f32 %v838_v21, %v825_v26  ;;  %v852_v29 = vmul.f32 %v838_v21, %v824_v27  ;;  %1967 = vmatmul.mubr.msk.bf16.vlgmr.msra.gmra.mxu1 %vm375_vm2, %v2041_v19  ;;  %906 = vmatprep.mubr.bf16.mxu0 %v2074_v8 }
  0xbb   : > { %949 = vmatprep.mubr.bf16.mxu1 %v2074_v8 }
  0xbc   : > { %v814_v31 = vpop.permute.xlu1 %813  ;;  %v812_v32 = vpop.permute.xlu0 %811  ;;  %v863_v33 = vpack.c.bf16 %v856_v28, %v852_v29 }
  0xbd   : > { %v823_v34 = vsel %vm819_vm4, %v810_v22, %v814_v31  ;;  %v822_v35 = vsel %vm819_vm4, %v808_v23, %v812_v32 }
  0xbe   : > { %888 = vmatprep.subr.bf16.mxu0 %v863_v33  ;;  %v857_v38 = vmul.f32 %v842_v30, %v823_v34  ;;  %v853_v39 = vmul.f32 %v842_v30, %v822_v35 }
  0xc0   : > { %v818_v40 = vpop.permute.xlu1 %817  ;;  %v816_v41 = vpop.permute.xlu0 %815  ;;  %v864_v57 = vpack.c.bf16 %v857_v38, %v853_v39 }
  0xc1   : > { %v821_v42 = vsel %vm819_vm4, %v814_v31, %v818_v40  ;;  %v827_v43 = vsel %vm819_vm4, %v818_v40, %v806_v15  ;;  %v820_v44 = vsel %vm819_vm4, %v812_v32, %v816_v41  ;;  %v826_v45 = vsel %vm819_vm4, %v816_v41, %v804_v16  ;;  %v1985_v32 = vld [vmem:[%s2671_s4 + $0x18] sm:$0xf] }
  0xc2   : > { %v855_v46 = vmul.f32 %v834_v36, %v827_v43  ;;  %v858_v47 = vmul.f32 %v846_v37, %v821_v42  ;;  %v851_v48 = vmul.f32 %v834_v36, %v826_v45  ;;  %v854_v49 = vmul.f32 %v846_v37, %v820_v44  ;;  %v2044_v37 = vld [vmem:[%s2668_s1 + $0x28] sm:$0xff]  }
  0xc3   : > { %v1116_v16 = vrot.slane %v1979_v50, %v2233_v20  ;;  %v1277_v38 = vrot.slane %v1985_v32, %v2222_v12  ;;  %v1273_v45 = vrot.slane %v1985_v32, %v2239_v24 }
  0xc4   : > { %v862_v52 = vpack.c.bf16 %v855_v46, %v851_v48  ;;  %v1084_v53 = vpop.permute.xlu1 %1083  ;;  %v1082_v54 = vpop.permute.xlu0 %1081  ;;  %v865_v55 = vpack.c.bf16 %v858_v47, %v854_v49 }
  0xc6   : > { %889 = vmatpush1.bf16.msra.mxu0 %v862_v52  ;;  %931 = vmatprep.subr.bf16.mxu1 %v865_v55 }
  0xc7   : > { %932 = vmatpush1.bf16.msra.mxu1 %v864_v57  ;;  %997 = vmatprep.subr.bf16.mxu0 %v972_v51 }
  0xc8   : > { %v1088_v6 = vpop.permute.xlu1 %1087  ;;  %v1086_v7 = vpop.permute.xlu0 %1085  ;;  %1040 = vmatprep.subr.bf16.mxu1 %v974_v56 }
  0xc9   : > { %v1097_v60 = vsel %vm1093_vm5, %v1084_v53, %v1088_v6  ;;  %v1096_v61 = vsel %vm1093_vm5, %v1082_v54, %v1086_v7  ;;  %1972 = vmatmul.mubr.msk.bf16.vlgmr.msra.gmra.mxu0 %vm375_vm2, %v2042_v58 }
  0xca   : > { %v1130_v62 = vmul.f32 %v1112_v59, %v1097_v60  ;;  %v1126_v63 = vmul.f32 %v1112_v59, %v1096_v61  ;;  %1973 = vmatmul.mubr.msk.bf16.vlgmr.msra.gmra.mxu1 %vm375_vm2, %v2042_v58  ;;  %998 = vmatpush1.bf16.msra.mxu0 %v971_v0 }
  0xcb   : > { %1041 = vmatpush1.bf16.msra.mxu1 %v973_v2  ;;  %1015 = vmatprep.mubr.bf16.mxu0 %v2074_v8 }
  0xcc   : > { %v1080_v3 = vpop.permute.xlu1 %1079  ;;  %v1078_v4 = vpop.permute.xlu0 %1077  ;;  %v1137_v5 = vpack.c.bf16 %v1130_v62, %v1126_v63  ;;  %1058 = vmatprep.mubr.bf16.mxu1 %v2074_v8  ;;  %v1991_v63 = vld [vmem:[%s2671_s4 + $0x1c] sm:$0xf] }
  0xcd   : > { %v1099_v9 = vsel %vm1093_vm5, %v1080_v3, %v1084_v53  ;;  %v1098_v10 = vsel %vm1093_vm5, %v1078_v4, %v1082_v54  ;;  %v1281_v53 = vrot.slane %v1985_v32, %v2233_v20  ;;  %v1285_v54 = vrot.slane %v1985_v32, %v2241_v25 }
  0xce   : > { %v1129_v14 = vmul.f32 %v1108_v1, %v1099_v9  ;;  %v1125_v15 = vmul.f32 %v1108_v1, %v1098_v10  ;;  %1162 = vmatprep.subr.bf16.mxu0 %v1137_v5  ;;  %v1442_v9 = vrot.slane %v1991_v63, %v2222_v12 }
  0xd0   : > { %v1136_v18 = vpack.c.bf16 %v1129_v14, %v1125_v15  ;;  %v1092_v19 = vpop.permute.xlu1 %1091  ;;  %v1090_v21 = vpop.permute.xlu0 %1089 }
  0xd1   : > { %v1095_v22 = vsel %vm1093_vm5, %v1088_v6, %v1092_v19  ;;  %v1101_v23 = vsel %vm1093_vm5, %v1092_v19, %v1080_v3  ;;  %v1094_v26 = vsel %vm1093_vm5, %v1086_v7, %v1090_v21  ;;  %v1100_v27 = vsel %vm1093_vm5, %v1090_v21, %v1078_v4  ;;  %1977 = vmatmul.mubr.msk.bf16.vlgmr.msra.gmra.mxu0 %vm375_vm2, %v2043_v13  ;;  %v2045_v6 = vld [vmem:[%s2668_s1 + $0x30] sm:$0xff]  }
  0xd2   : > { %v1131_v28 = vmul.f32 %v1116_v16, %v1095_v22  ;;  %v1132_v29 = vmul.f32 %v1120_v17, %v1101_v23  ;;  %v1127_v30 = vmul.f32 %v1116_v16, %v1094_v26  ;;  %v1128_v31 = vmul.f32 %v1120_v17, %v1100_v27  ;;  %1978 = vmatmul.mubr.msk.bf16.vlgmr.msra.gmra.mxu1 %vm375_vm2, %v2043_v13 }
  0xd3   : > { %1163 = vmatpush1.bf16.msra.mxu0 %v1136_v18  ;;  %1180 = vmatprep.mubr.bf16.mxu0 %v2074_v8  ;;  %v1438_v18 = vrot.slane %v1991_v63, %v2239_v24 }
  0xd4   : > { %v1138_v33 = vpack.c.bf16 %v1131_v28, %v1127_v30  ;;  %v1249_v34 = vpop.permute.xlu1 %1248  ;;  %v1247_v35 = vpop.permute.xlu0 %1246  ;;  %v1139_v36 = vpack.c.bf16 %v1132_v29, %v1128_v31  ;;  %1223 = vmatprep.mubr.bf16.mxu1 %v2074_v8  ;;  %v1446_v29 = vrot.slane %v1991_v63, %v2233_v20  ;;  %v1450_v30 = vrot.slane %v1991_v63, %v2241_v25 }
  0xd6   : > { %1205 = vmatprep.subr.bf16.mxu1 %v1139_v36 }
  0xd7   : > { %1206 = vmatpush1.bf16.msra.mxu1 %v1138_v33 }
  0xd8   : > { %v1253_v39 = vpop.permute.xlu1 %1252  ;;  %v1251_v40 = vpop.permute.xlu0 %1250 }
  0xd9   : > { %v1262_v41 = vsel %vm1258_vm6, %v1249_v34, %v1253_v39  ;;  %v1261_v42 = vsel %vm1258_vm6, %v1247_v35, %v1251_v40  ;;  %1983 = vmatmul.mubr.msk.bf16.vlgmr.msra.gmra.mxu0 %vm375_vm2, %v2044_v37 }
  0xda   : > { %v1295_v43 = vmul.f32 %v1277_v38, %v1262_v41  ;;  %v1291_v44 = vmul.f32 %v1277_v38, %v1261_v42  ;;  %1984 = vmatmul.mubr.msk.bf16.vlgmr.msra.gmra.mxu1 %vm375_vm2, %v2044_v37  ;;  %1345 = vmatprep.mubr.bf16.mxu0 %v2074_v8  ;;  %v2046_v38 = vld [vmem:[%s2668_s1 + $0x38] sm:$0xff]  }
  0xdb   : > { %1388 = vmatprep.mubr.bf16.mxu1 %v2074_v8 }
  0xdc   : > { %v1245_v46 = vpop.permute.xlu1 %1244  ;;  %v1243_v47 = vpop.permute.xlu0 %1242  ;;  %v1302_v48 = vpack.c.bf16 %v1295_v43, %v1291_v44  ;;  %v1997_v43 = vld [vmem:[%s2671_s4 + $0x20] sm:$0xf] }
  0xdd   : > { %v1264_v49 = vsel %vm1258_vm6, %v1245_v46, %v1249_v34  ;;  %v1263_v50 = vsel %vm1258_vm6, %v1243_v47, %v1247_v35 }
  0xde   : > { %v1294_v51 = vmul.f32 %v1273_v45, %v1264_v49  ;;  %v1290_v52 = vmul.f32 %v1273_v45, %v1263_v50  ;;  %1327 = vmatprep.subr.bf16.mxu0 %v1302_v48  ;;  %v1607_v48 = vrot.slane %v1997_v43, %v2222_v12 }
  0xe0   : > { %v1301_v55 = vpack.c.bf16 %v1294_v51, %v1290_v52  ;;  %v1257_v56 = vpop.permute.xlu1 %1256  ;;  %v1255_v57 = vpop.permute.xlu0 %1254 }
  0xe1   : > { %v1260_v58 = vsel %vm1258_vm6, %v1253_v39, %v1257_v56  ;;  %v1266_v59 = vsel %vm1258_vm6, %v1257_v56, %v1245_v46  ;;  %v1259_v0 = vsel %vm1258_vm6, %v1251_v40, %v1255_v57  ;;  %v1265_v2 = vsel %vm1258_vm6, %v1255_v57, %v1243_v47 }
  0xe2   : > { %v1296_v7 = vmul.f32 %v1281_v53, %v1260_v58  ;;  %v1297_v60 = vmul.f32 %v1285_v54, %v1266_v59  ;;  %v1292_v61 = vmul.f32 %v1281_v53, %v1259_v0  ;;  %v1293_v62 = vmul.f32 %v1285_v54, %v1265_v2  ;;  %1328 = vmatpush1.bf16.msra.mxu0 %v1301_v55 }
  0xe3   : > { %v1603_v55 = vrot.slane %v1997_v43, %v2239_v24 }
  0xe4   : > { %v1303_v1 = vpack.c.bf16 %v1296_v7, %v1292_v61  ;;  %v1414_v3 = vpop.permute.xlu1 %1413  ;;  %v1412_v4 = vpop.permute.xlu0 %1411  ;;  %v1304_v5 = vpack.c.bf16 %v1297_v60, %v1293_v62  ;;  %v1615_v7 = vrot.slane %v1997_v43, %v2241_v25 }
  0xe5   : > { %1989 = vmatmul.mubr.msk.bf16.vlgmr.msra.gmra.mxu0 %vm375_vm2, %v2045_v6 }
  0xe6   : > { %1370 = vmatprep.subr.bf16.mxu1 %v1304_v5  ;;  %1510 = vmatprep.mubr.bf16.mxu0 %v2074_v8 }
  0xe7   : > { %1371 = vmatpush1.bf16.msra.mxu1 %v1303_v1 }
  0xe8   : > { %v1418_v10 = vpop.permute.xlu1 %1417  ;;  %v1416_v13 = vpop.permute.xlu0 %1415 }
  0xe9   : > { %v1427_v14 = vsel %vm1423_vm7, %v1414_v3, %v1418_v10  ;;  %v1426_v15 = vsel %vm1423_vm7, %v1412_v4, %v1416_v13 }
  0xea   : > { %v1460_v16 = vmul.f32 %v1442_v9, %v1427_v14  ;;  %v1456_v17 = vmul.f32 %v1442_v9, %v1426_v15  ;;  %1990 = vmatmul.mubr.msk.bf16.vlgmr.msra.gmra.mxu1 %vm375_vm2, %v2045_v6  ;;  %v1611_v6 = vrot.slane %v1997_v43, %v2233_v20  ;;  %v2047_v20 = vld [vmem:[%s2668_s1 + $0x40] sm:$0xff]  }
  0xeb   : > { %1553 = vmatprep.mubr.bf16.mxu1 %v2074_v8 }
  0xec   : > { %v1410_v19 = vpop.permute.xlu1 %1409  ;;  %v1408_v21 = vpop.permute.xlu0 %1407  ;;  %v1467_v22 = vpack.c.bf16 %v1460_v16, %v1456_v17 }
  0xed   : > { %v1429_v23 = vsel %vm1423_vm7, %v1410_v19, %v1414_v3  ;;  %v1428_v26 = vsel %vm1423_vm7, %v1408_v21, %v1412_v4 }
  0xee   : > { %v1459_v27 = vmul.f32 %v1438_v18, %v1429_v23  ;;  %v1455_v28 = vmul.f32 %v1438_v18, %v1428_v26  ;;  %1492 = vmatprep.subr.bf16.mxu0 %v1467_v22 }
  0xf0   : > { %v1466_v31 = vpack.c.bf16 %v1459_v27, %v1455_v28  ;;  %v1422_v32 = vpop.permute.xlu1 %1421  ;;  %v1420_v33 = vpop.permute.xlu0 %1419 }
  0xf1   : > { %v1425_v34 = vsel %vm1423_vm7, %v1418_v10, %v1422_v32  ;;  %v1431_v35 = vsel %vm1423_vm7, %v1422_v32, %v1410_v19  ;;  %v1424_v36 = vsel %vm1423_vm7, %v1416_v13, %v1420_v33  ;;  %v1430_v37 = vsel %vm1423_vm7, %v1420_v33, %v1408_v21 }
  0xf2   : > { %v1461_v39 = vmul.f32 %v1446_v29, %v1425_v34  ;;  %v1462_v40 = vmul.f32 %v1450_v30, %v1431_v35  ;;  %v1457_v41 = vmul.f32 %v1446_v29, %v1424_v36  ;;  %v1458_v42 = vmul.f32 %v1450_v30, %v1430_v37  ;;  %1493 = vmatpush1.bf16.msra.mxu0 %v1466_v31 }
  0xf4   : > { %v1468_v44 = vpack.c.bf16 %v1461_v39, %v1457_v41  ;;  %v1579_v45 = vpop.permute.xlu1 %1578  ;;  %v1577_v46 = vpop.permute.xlu0 %1576  ;;  %v1469_v47 = vpack.c.bf16 %v1462_v40, %v1458_v42 }
  0xf5   : > { %1995 = vmatmul.mubr.msk.bf16.vlgmr.msra.gmra.mxu0 %vm375_vm2, %v2046_v38 }
  0xf6   : > { %1535 = vmatprep.subr.bf16.mxu1 %v1469_v47  ;;  %1675 = vmatprep.mubr.bf16.mxu0 %v2074_v8 }
  0xf7   : > { %1536 = vmatpush1.bf16.msra.mxu1 %v1468_v44 }
  0xf8   : > { %v1583_v49 = vpop.permute.xlu1 %1582  ;;  %v1581_v50 = vpop.permute.xlu0 %1580 }
  0xf9   : > { %v1592_v51 = vsel %vm1588_vm8, %v1579_v45, %v1583_v49  ;;  %v1591_v52 = vsel %vm1588_vm8, %v1577_v46, %v1581_v50 }
  0xfa   : > { %v1625_v53 = vmul.f32 %v1607_v48, %v1592_v51  ;;  %v1621_v54 = vmul.f32 %v1607_v48, %v1591_v52  ;;  %1996 = vmatmul.mubr.msk.bf16.vlgmr.msra.gmra.mxu1 %vm375_vm2, %v2046_v38 }
  0xfb   : > { %1718 = vmatprep.mubr.bf16.mxu1 %v2074_v8 }
  0xfc   : > { %v1575_v12 = vpop.permute.xlu1 %1574  ;;  %v1573_v56 = vpop.permute.xlu0 %1572  ;;  %v1632_v57 = vpack.c.bf16 %v1625_v53, %v1621_v54 }
  0xfd   : > { %v1594_v58 = vsel %vm1588_vm8, %v1575_v12, %v1579_v45  ;;  %v1593_v59 = vsel %vm1588_vm8, %v1573_v56, %v1577_v46 }
  0xfe   : > { %v1624_v0 = vmul.f32 %v1603_v55, %v1594_v58  ;;  %v1620_v2 = vmul.f32 %v1603_v55, %v1593_v59  ;;  %1657 = vmatprep.subr.bf16.mxu0 %v1632_v57 }
 0x100   : > { %v1631_v60 = vpack.c.bf16 %v1624_v0, %v1620_v2  ;;  %v1587_v24 = vpop.permute.xlu1 %1586  ;;  %v1585_v61 = vpop.permute.xlu0 %1584 }
 0x101   : > { %v1590_v8 = vsel %vm1588_vm8, %v1583_v49, %v1587_v24  ;;  %v1596_v62 = vsel %vm1588_vm8, %v1587_v24, %v1575_v12  ;;  %v1589_v63 = vsel %vm1588_vm8, %v1581_v50, %v1585_v61  ;;  %v1595_v1 = vsel %vm1588_vm8, %v1585_v61, %v1573_v56 }
 0x102   : > { %v1626_v25 = vmul.f32 %v1611_v6, %v1590_v8  ;;  %v1627_v3 = vmul.f32 %v1615_v7, %v1596_v62  ;;  %v1622_v4 = vmul.f32 %v1611_v6, %v1589_v63  ;;  %v1623_v5 = vmul.f32 %v1615_v7, %v1595_v1  ;;  %1658 = vmatpush1.bf16.msra.mxu0 %v1631_v60 }
 0x104   : > { %v1633_v9 = vpack.c.bf16 %v1626_v25, %v1622_v4  ;;  %v1634_v10 = vpack.c.bf16 %v1627_v3, %v1623_v5 }
 0x105   : > { %2001 = vmatmul.mubr.msk.bf16.vlgmr.msra.gmra.mxu0 %vm375_vm2, %v2047_v20 }
 0x106   : > { %1700 = vmatprep.subr.bf16.mxu1 %v1634_v10 }
 0x107   : > { %1701 = vmatpush1.bf16.msra.mxu1 %v1633_v9 }
 0x10a   : > { %2002 = vmatmul.mubr.msk.bf16.vlgmr.msra.gmra.mxu1 %vm375_vm2, %v2047_v20 }
 0x10d   : > { %v305_v61 = vpop.permute.xlu1 %304 }
 0x10e   : > { %v300_v24 = vpop.permute.xlu0 %299 }
 0x159   : > { %v413_v13 = vpop.f32.mrf.mxu0 }
 0x15a   : > { %v456_v11 = vpop.f32.mrf.mxu1  ;;  %v465_v62 = vadd.f32 %v413_v13, %v300_v24 }
 0x15b   : > { %v415_v14 = vpop.f32.mrf.mxu0  ;;  %v467_v9 = vadd.f32 %v456_v11, %v300_v24 }
 0x15c   : > { %v2503_v15 = vpop.f32.mrf.mxu1  ;;  %v466_v20 = vadd.f32 %v415_v14, %v300_v24 }
 0x15d   : > { %v417_v16 = vpop.f32.mrf.mxu0 }
 0x15e   : > { %v460_v17 = vpop.f32.mrf.mxu1  ;;  %v469_v1 = vadd.f32 %v417_v16, %v305_v61 }
 0x15f   : > { %v419_v18 = vpop.f32.mrf.mxu0 }
 0x160   : > { %v2505_v19 = vpop.f32.mrf.mxu1  ;;  %v470_v3 = vadd.f32 %v419_v18, %v305_v61 }
 0x161   : > { %v472_v13 = vadd.f32 %v2505_v19, %v305_v61 }
 0x169   : > { %v578_v21 = vpop.f32.mrf.mxu0 }
 0x16a   : > { %v2507_v22 = vpop.f32.mrf.mxu1  ;;  %v630_v4 = vadd.f32 %v578_v21, %v465_v62 }
 0x16b   : > { %v580_v23 = vpop.f32.mrf.mxu0  ;;  %v632_v14 = vadd.f32 %v2507_v22, %v467_v9 }
 0x16c   : > { %v2509_v26 = vpop.f32.mrf.mxu1 }
 0x16d   : > { %v582_v27 = vpop.f32.mrf.mxu0 }
 0x16e   : > { %v2511_v28 = vpop.f32.mrf.mxu1 }
 0x16f   : > { %v584_v29 = vpop.f32.mrf.mxu0 }
 0x170   : > { %v2513_v30 = vpop.f32.mrf.mxu1 }
 0x179   : > { %v743_v31 = vpop.f32.mrf.mxu0 }
 0x17a   : > { %v2515_v32 = vpop.f32.mrf.mxu1 }
 0x17b   : > { %v745_v33 = vpop.f32.mrf.mxu0 }
 0x17c   : > { %v2517_v34 = vpop.f32.mrf.mxu1 }
 0x17d   : > { %v747_v35 = vpop.f32.mrf.mxu0 }
 0x17e   : > { %v2519_v36 = vpop.f32.mrf.mxu1 }
 0x17f   : > { %v749_v37 = vpop.f32.mrf.mxu0 }
 0x180   : > { %v2521_v38 = vpop.f32.mrf.mxu1 }
 0x189   : > { %v908_v39 = vpop.f32.mrf.mxu0 }
 0x18a   : > { %v2523_v40 = vpop.f32.mrf.mxu1 }
 0x18b   : > { %v910_v41 = vpop.f32.mrf.mxu0 }
 0x18c   : > { %v2525_v42 = vpop.f32.mrf.mxu1 }
 0x18d   : > { %v912_v43 = vpop.f32.mrf.mxu0 }
 0x18e   : > { %v2527_v44 = vpop.f32.mrf.mxu1 }
 0x18f   : > { %v914_v45 = vpop.f32.mrf.mxu0 }
 0x190   : > { %v2529_v46 = vpop.f32.mrf.mxu1 }
 0x191   : > { %v1017_v47 = vpop.f32.mrf.mxu0 }
 0x192   : > { %v2531_v48 = vpop.f32.mrf.mxu1 }
 0x193   : > { %v1019_v49 = vpop.f32.mrf.mxu0 }
 0x194   : > { %v2533_v50 = vpop.f32.mrf.mxu1 }
 0x195   : > { %v1021_v51 = vpop.f32.mrf.mxu0 }
 0x196   : > { %v2535_v53 = vpop.f32.mrf.mxu1 }
 0x197   : > { %v1023_v52 = vpop.f32.mrf.mxu0  ;;  %2674 = vst [vmem:[#allocation2_spill] sm:$0xff] %v2535_v53 }
 0x198   : > { %v2537_v55 = vpop.f32.mrf.mxu1 }
 0x199   : > { %v1182_v54 = vpop.f32.mrf.mxu0  ;;  %2675 = vst [vmem:[#allocation3_spill] sm:$0xff] %v2537_v55  ;;  %v795_v55 = vadd.f32 %v743_v31, %v630_v4 }
 0x19a   : > { %v2539_v56 = vpop.f32.mrf.mxu1 }
 0x19b   : > { %v1184_v12 = vpop.f32.mrf.mxu0  ;;  %2676 = vst [vmem:[#allocation4_spill] sm:$0xff] %v2539_v56  ;;  %v635_v56 = vadd.f32 %v584_v29, %v470_v3  ;;  %v797_v29 = vadd.f32 %v2515_v32, %v632_v14 }
 0x19c   : > { %v2541_v58 = vpop.f32.mrf.mxu1 }
 0x19d   : > { %v1186_v57 = vpop.f32.mrf.mxu0  ;;  %2677 = vst [vmem:[#allocation5_spill] sm:$0xff] %v2541_v58  ;;  %v471_v58 = vadd.f32 %v460_v17, %v305_v61  ;;  %v960_v17 = vadd.f32 %v908_v39, %v795_v55 }
 0x19e   : > { %v2543_v0 = vpop.f32.mrf.mxu1 }
 0x19f   : > { %v1188_v59 = vpop.f32.mrf.mxu0  ;;  %2678 = vst [vmem:[#allocation6_spill] sm:$0xff] %v2543_v0  ;;  %v631_v0 = vadd.f32 %v580_v23, %v466_v20  ;;  %v636_v11 = vadd.f32 %v2511_v28, %v471_v58 }
 0x1a0   : > { %v2545_v6 = vpop.f32.mrf.mxu1 }
 0x1a1   : > { %2679 = vst [vmem:[#allocation7_spill] sm:$0xff] %v2545_v6  ;;  %v634_v6 = vadd.f32 %v582_v27, %v469_v1  ;;  %v796_v18 = vadd.f32 %v745_v33, %v631_v0  ;;  %v800_v27 = vadd.f32 %v749_v37, %v635_v56  ;;  %v801_v22 = vadd.f32 %v2519_v36, %v636_v11 }
 0x1a2   : > { %v1069_v0 = vadd.f32 %v1017_v47, %v960_v17  ;;  %v962_v37 = vadd.f32 %v2523_v40, %v797_v29 }
 0x1a3   : > { %v799_v21 = vadd.f32 %v747_v35, %v634_v6  ;;  %v965_v35 = vadd.f32 %v914_v45, %v800_v27 }
 0x1a4   : > { %v1234_v55 = vadd.f32 %v1182_v54, %v1069_v0 }
 0x1a5   : > { %v1347_v2 = vpop.f32.mrf.mxu0  ;;  %v964_v1 = vadd.f32 %v912_v43, %v799_v21  ;;  %v966_v43 = vadd.f32 %v2527_v44, %v801_v22 }
 0x1a6   : > { %v1399_v45 = vadd.f32 %v1347_v2, %v1234_v55  ;;  %v2685_v4 = vld [vmem:[#allocation6_spill] sm:$0xff] }
 0x1a7   : > { %v1349_v7 = vpop.f32.mrf.mxu0  ;;  %v1073_v28 = vadd.f32 %v1021_v51, %v964_v1 }
 0x1a9   : > { %v1351_v8 = vpop.f32.mrf.mxu0  ;;  %v1238_v56 = vadd.f32 %v1186_v57, %v1073_v28 }
 0x1aa   : > { %v2547_v60 = vpop.f32.mrf.mxu1 }
 0x1ab   : > { %2680 = vst [vmem:[#allocation8_spill] sm:$0xff] %v2547_v60  ;;  %v1353_v25 = vpop.f32.mrf.mxu0  ;;  %v468_v60 = vadd.f32 %v2503_v15, %v300_v24  ;;  %v637_v15 = vadd.f32 %v2513_v30, %v472_v13  ;;  %v961_v24 = vadd.f32 %v910_v41, %v796_v18  ;;  %v1074_v30 = vadd.f32 %v1023_v52, %v965_v35  ;;  %v2681_v52 = vld [vmem:[#allocation2_spill] sm:$0xff] }
 0x1ac   : > { %v2549_v63 = vpop.f32.mrf.mxu1  ;;  %v1075_v54 = vadd.f32 %v2681_v52, %v966_v43 }
 0x1ad   : > { %v633_v23 = vadd.f32 %v2509_v26, %v468_v60  ;;  %v1070_v6 = vadd.f32 %v1019_v49, %v961_v24  ;;  %v802_v26 = vadd.f32 %v2521_v38, %v637_v15  ;;  %v1403_v49 = vadd.f32 %v1351_v8, %v1238_v56 }
 0x1ae   : > { %v2551_v5 = vpop.f32.mrf.mxu1  ;;  %v1071_v38 = vadd.f32 %v2531_v48, %v962_v37 }
 0x1af   : > { %v798_v33 = vadd.f32 %v2517_v34, %v633_v23  ;;  %v1235_v32 = vadd.f32 %v1184_v12, %v1070_v6  ;;  %v1239_v34 = vadd.f32 %v1188_v59, %v1074_v30  ;;  %v967_v51 = vadd.f32 %v2529_v46, %v802_v26  ;;  %v2683_v59 = vld [vmem:[#allocation4_spill] sm:$0xff] }
 0x1b0   : > { %v2554_v53 = vpop.f32.mrf.mxu1  ;;  %v1236_v2 = vadd.f32 %v2683_v59, %v1071_v38  ;;  %v1240_v46 = vadd.f32 %v2685_v4, %v1075_v54 }
 0x1b1   : > { %v963_v36 = vadd.f32 %v2525_v42, %v798_v33  ;;  %v1400_v47 = vadd.f32 %v1349_v7, %v1235_v32  ;;  %v1404_v57 = vadd.f32 %v1353_v25, %v1239_v34  ;;  %v2682_v42 = vld [vmem:[#allocation3_spill] sm:$0xff]  ;;  %v2684_v7 = vld [vmem:[#allocation5_spill] sm:$0xff] }
 0x1b2   : > { %v1076_v3 = vadd.f32 %v2682_v42, %v967_v51  ;;  %v2687_v18 = vld [vmem:[#allocation8_spill] sm:$0xff]  ;;  %v1405_v23 = vadd.f32 %v2551_v5, %v1240_v46 }
 0x1b3   : > { %v1072_v40 = vadd.f32 %v2533_v50, %v963_v36  ;;  %v1401_v21 = vadd.f32 %v2687_v18, %v1236_v2 }
 0x1b5   : > { %v1512_v10 = vpop.f32.mrf.mxu0  ;;  %v1237_v8 = vadd.f32 %v2684_v7, %v1072_v40 }
 0x1b6   : > { %v1564_v60 = vadd.f32 %v1512_v10, %v1399_v45  ;;  %v2686_v10 = vld [vmem:[#allocation7_spill] sm:$0xff] }
 0x1b7   : > { %v1514_v16 = vpop.f32.mrf.mxu0  ;;  %v1402_v11 = vadd.f32 %v2549_v63, %v1237_v8 }
 0x1b8   : > { %v1565_v61 = vadd.f32 %v1514_v16, %v1400_v47  ;;  %v1241_v16 = vadd.f32 %v2686_v10, %v1076_v3 }
 0x1b9   : > { %v1516_v31 = vpop.f32.mrf.mxu0 }
 0x1ba   : > { %v1555_v62 = vpop.f32.mrf.mxu1  ;;  %v1568_v44 = vadd.f32 %v1516_v31, %v1403_v49  ;;  %v1406_v31 = vadd.f32 %v2554_v53, %v1241_v16 }
 0x1bb   : > { %v1518_v39 = vpop.f32.mrf.mxu0  ;;  %v1566_v24 = vadd.f32 %v1555_v62, %v1401_v21 }
 0x1bc   : > { %v1557_v19 = vpop.f32.mrf.mxu1  ;;  %v1569_v48 = vadd.f32 %v1518_v39, %v1404_v57 }
 0x1bd   : > { %v1567_v1 = vadd.f32 %v1557_v19, %v1402_v11 }
 0x1be   : > { %v1559_v41 = vpop.f32.mrf.mxu1 }
 0x1bf   : > { %v1570_v22 = vadd.f32 %v1559_v41, %v1405_v23 }
 0x1c0   : > { %v1561_v20 = vpop.f32.mrf.mxu1 }
 0x1c1   : > { %v1571_v0 = vadd.f32 %v1561_v20, %v1406_v31 }
 0x1c5   : > { %v1677_v58 = vpop.f32.mrf.mxu0 }
 0x1c6   : > { %v2576_v13 = vadd.f32 %v1677_v58, %v1564_v60  ;;  %v1737_v58 = vld [vmem:[%s2670_s3] sm:$0xff] }
 0x1c7   : > { %v1679_v12 = vpop.f32.mrf.mxu0 }
 0x1c8   : > { %v2578_v50 = vadd.f32 %v1679_v12, %v1565_v61  ;;  %v1738_v33 = vmul.f32 %v2576_v13, %v2576_v13 }
 0x1c9   : > { %v1681_v9 = vpop.f32.mrf.mxu0 }
 0x1ca   : > { %v2580_v14 = vadd.f32 %v1681_v9, %v1568_v44  ;;  %v1720_v25 = vpop.f32.mrf.mxu1  ;;  %v1739_v63 = vmul.f32 %v2578_v50, %v2578_v50 }
 0x1cb   : > { %v1683_v27 = vpop.f32.mrf.mxu0  ;;  %v2597_v6 = vadd.f32 %v1720_v25, %v1566_v24 }
 0x1cc   : > { %v1740_v17 = vmul.f32 %v2580_v14, %v2580_v14  ;;  %v2588_v15 = vadd.f32 %v1683_v27, %v1569_v48  ;;  %v1722_v29 = vpop.f32.mrf.mxu1 }
 0x1cd   : > { %v2599_v28 = vadd.f32 %v1722_v29, %v1567_v1  ;;  %v1801_v55 = vmul.f32 %v2597_v6, %v2597_v6 }
 0x1ce   : > { %v1741_v5 = vmul.f32 %v2588_v15, %v2588_v15  ;;  %v1724_v35 = vpop.f32.mrf.mxu1  ;;  %v1742_v62 = vadd.f32 %v1740_v17, %v1738_v33 }
 0x1cf   : > { %v2601_v26 = vadd.f32 %v1724_v35, %v1570_v22  ;;  %v1802_v32 = vmul.f32 %v2599_v28, %v2599_v28 }
 0x1d0   : > { %v1726_v53 = vpop.f32.mrf.mxu1  ;;  %v1743_v19 = vadd.f32 %v1741_v5, %v1739_v63  ;;  %v1789_v5 = vld [vmem:[%s2624_s14] sm:$0xff] }
 0x1d1   : > { %v1803_v37 = vmul.f32 %v2601_v26, %v2601_v26  ;;  %v2605_v39 = vadd.f32 %v1726_v53, %v1571_v0 }
 0x1d2   : > { %v1744_v30 = vadd.f32 %v1743_v19, %v1742_v62  ;;  %v1790_v19 = vld [vmem:[%s2624_s14 + $0x8] sm:$0xff] }
 0x1d3   : > { %v1804_v56 = vmul.f32 %v2605_v39, %v2605_v39  ;;  %v1805_v41 = vadd.f32 %v1803_v37, %v1801_v55  ;;  %v1791_v37 = vld [vmem:[%s2624_s14 + $0x10] sm:$0xff]  ;;  %v2056_v55 = vld [vmem:[%s2132_s27] sm:$0xff] }
 0x1d4   : > { %1745 = vadd.xlane.f32.xlu1 %v1744_v30  ;;  %v1792_v30 = vld [vmem:[%s2624_s14 + $0x18] sm:$0xff] }
 0x1d5   : > { %v1806_v43 = vadd.f32 %v1804_v56, %v1802_v32  ;;  %v2057_v56 = vld [vmem:[%s2132_s27 + $0x8] sm:$0xff] }
 0x1d7   : > { %v1807_v36 = vadd.f32 %v1806_v43, %v1805_v41  ;;  %v2058_v43 = vld [vmem:[%s2132_s27 + $0x10] sm:$0xff] }
 0x1d9   : > { %1808 = vadd.xlane.f32.xlu0 %v1807_v36 }
 0x25d   : > { %v1746_v34 = vpop.xlane.xlu1 %1745 }
 0x25e   : > { %v1747_v45 = vmul.f32 0.00390625, %v1746_v34 }
 0x260   : > { %v1748_v47 = vmul.f32 %v1747_v45, %v1737_v58 }
 0x262   : > { %v1750_v49 = vsel %vm1749_vm9, %v1748_v47, 0.0  ;;  %v1809_v51 = vpop.xlane.xlu0 %1808  ;;  %v2005_v47 = vld [vmem:[%s2624_s14 + $0x20] sm:$0xff] }
 0x263   : > { %v1751_v38 = vrot.slane %v1750_v49, 4  ;;  %v1810_v40 = vmul.f32 0.00390625, %v1809_v51 }
 0x265   : > { %v1752_v52 = vadd.f32 %v1751_v38, %v1750_v49  ;;  %v1811_v54 = vmul.f32 %v1810_v40, %v1737_v58 }
 0x267   : > { %v1753_v12 = vrot.slane %v1752_v52, 2  ;;  %v1812_v57 = vsel %vm1749_vm9, %v1811_v54, 0.0  ;;  %v2007_v54 = vld [vmem:[%s2624_s14 + $0x30] sm:$0xff] }
 0x268   : > { %v1813_v60 = vrot.slane %v1812_v57, 4 }
 0x269   : > { %v1754_v61 = vadd.f32 %v1753_v12, %v1752_v52  ;;  %v2006_v52 = vld [vmem:[%s2624_s14 + $0x28] sm:$0xff]  ;;  %v2008_v12 = vld [vmem:[%s2624_s14 + $0x38] sm:$0xff] }
 0x26a   : > { %v1814_v44 = vadd.f32 %v1813_v60, %v1812_v57  ;;  %v2060_v57 = vld [vmem:[%s2132_s27 + $0x20] sm:$0xff]  ;;  %v2061_v60 = vld [vmem:[%s2132_s27 + $0x28] sm:$0xff] }
 0x26b   : > { %v1755_v20 = vrot.slane %v1754_v61, 1 }
 0x26c   : > { %v1815_v42 = vrot.slane %v1814_v44, 2 }
 0x26d   : > { %v1756_v3 = vadd.f32 %v1755_v20, %v1754_v61  ;;  %v2062_v61 = vld [vmem:[%s2132_s27 + $0x30] sm:$0xff] }
 0x26e   : > { %v1816_v59 = vadd.f32 %v1815_v42, %v1814_v44 }
 0x26f   : > { %v1757_v2 = vmax.f32 %v1756_v3, 0.0 }
 0x270   : > { %v1817_v7 = vrot.slane %v1816_v59, 1 }
 0x271   : > { %1759 = vrot.lane.b32.xlu0 %v1757_v2, %s2081_s10 }
 0x272   : > { %v1818_v8 = vadd.f32 %v1817_v7, %v1816_v59 }
 0x274   : > { %v1819_v4 = vmax.f32 %v1818_v8, 0.0 }
 0x276   : > { %1821 = vrot.lane.b32.xlu1 %v1819_v4, %s2081_s10 }
 0x2e3   : > { %v1760_v46 = vpop.permute.xlu0 %1759 }
 0x2e4   : > { %v1762_v9 = vmul.f32 %v1760_v46, %v1737_v58 }
 0x2e6   : > { %1764 = vrot.lane.b32.xlu1 %v1762_v9, %s2082_s11 }
 0x2e8   : > { %v1822_v48 = vpop.permute.xlu1 %1821 }
 0x2e9   : > { %v1824_v25 = vmul.f32 %v1822_v48, %v1737_v58  ;;  %v2059_v58 = vld [vmem:[%s2132_s27 + $0x18] sm:$0xff] }
 0x2eb   : > { %1826 = vrot.lane.b32.xlu0 %v1824_v25, %s2082_s11 }
 0x358   : > { %v1765_v10 = vpop.permute.xlu1 %1764 }
 0x359   : > { %v1767_v16 = vsel %vm1749_vm9, %v1765_v10, 0.0 }
 0x35a   : > { %1768 = vadd.xlane.f32.xlu1 %v1767_v16 }
 0x35d   : > { %v1827_v18 = vpop.permute.xlu0 %1826 }
 0x35e   : > { %v1829_v21 = vsel %vm1749_vm9, %v1827_v18, 0.0 }
 0x35f   : > { %1830 = vadd.xlane.f32.xlu0 %v1829_v21 }
 0x3e3   : > { %v1769_v11 = vpop.xlane.xlu1 %1768 }
 0x3e4   : > { %v2003_v23 = vmul.f32 -1.442695, %v1769_v11 }
 0x3e6   : > { %2048 = vpow2.f32 %v2003_v23 }
 0x3e8   : > { %v1831_v27 = vpop.xlane.xlu0 %1830 }
 0x3e9   : > { %v2004_v17 = vmul.f32 -1.442695, %v1831_v27 }
 0x3eb   : > { %2050 = vpow2.f32 %v2004_v17 }
 0x3f3   : > { %v2049_v29 = vpop.eup %2048 }
 0x3f4   : > { %v1773_v31 = vadd.f32 1.0, %v2049_v29 }
 0x3f6   : > { %2052 = vrcp.f32 %v1773_v31 }
 0x3f8   : > { %v2051_v24 = vpop.eup %2050 }
 0x3f9   : > { %v1835_v1 = vadd.f32 1.0, %v2051_v24 }
 0x3fb   : > { %2054 = vrcp.f32 %v1835_v1 }
 0x403   : > { %v2053_v22 = vpop.eup %2052 }
 0x404   : > { %1778 = vperm.xlu0 %2037, %v2053_v22  }
 0x408   : > { %v2055_v33 = vpop.eup %2054 }
 0x409   : > { %1840 = vperm.xlu1 %2038, %v2055_v33  }
 0x47f   : > { %v1779_v63 = vpop.permute.xlu0 %1778 }
 0x480   : > { %v1781_v35 = vmul.f32 %v1779_v63, %v2576_v13  ;;  %v1782_v0 = vmul.f32 %v1779_v63, %v2578_v50  ;;  %v1783_v53 = vmul.f32 %v1779_v63, %v2580_v14  ;;  %v1784_v62 = vmul.f32 %v1779_v63, %v2588_v15 }
 0x482   : > { %v1785_v32 = vadd.f32 %v2056_v55, %v1781_v35  ;;  %v1786_v41 = vadd.f32 %v2057_v56, %v1782_v0  ;;  %v1787_v36 = vadd.f32 %v2058_v43, %v1783_v53  ;;  %v1788_v34 = vadd.f32 %v2059_v58, %v1784_v62 }
 0x484   : > { %v1793_v13 = vadd.f32 %v1789_v5, %v1785_v32  ;;  %v1794_v50 = vadd.f32 %v1790_v19, %v1786_v41  ;;  %v1795_v14 = vadd.f32 %v1791_v37, %v1787_v36  ;;  %v1796_v15 = vadd.f32 %v1792_v30, %v1788_v34  ;;  %v1841_v45 = vpop.permute.xlu1 %1840 }
 0x485   : > { %v1843_v49 = vmul.f32 %v1841_v45, %v2597_v6  ;;  %v1844_v51 = vmul.f32 %v1841_v45, %v2599_v28  ;;  %v1845_v38 = vmul.f32 %v1841_v45, %v2601_v26  ;;  %v1846_v40 = vmul.f32 %v1841_v45, %v2605_v39  ;;  %v2063_v26 = vld [vmem:[%s2132_s27 + $0x38] sm:$0xff] }
 0x486   : > { %1797 = vst [vmem:[%s2642_s17] sm:$0xff] %v1793_v13  ;;  %1798 = vst [vmem:[%s2642_s17 + $0x8] sm:$0xff] %v1794_v50 }
 0x487   : > { %1799 = vst [vmem:[%s2642_s17 + $0x10] sm:$0xff] %v1795_v14  ;;  %1800 = vst [vmem:[%s2642_s17 + $0x18] sm:$0xff] %v1796_v15  ;;  %v1847_v6 = vadd.f32 %v2060_v57, %v1843_v49  ;;  %v1848_v28 = vadd.f32 %v2061_v60, %v1844_v51  ;;  %v1849_v44 = vadd.f32 %v2062_v61, %v1845_v38 }
 0x488   : > { %v1850_v20 = vadd.f32 %v2063_v26, %v1846_v40 }
 0x489   : > { %v1856_v39 = vadd.f32 %v2005_v47, %v1847_v6  ;;  %v1857_v42 = vadd.f32 %v2006_v52, %v1848_v28  ;;  %v1858_v3 = vadd.f32 %v2007_v54, %v1849_v44 }
 0x48a   : > { %v1859_v59 = vadd.f32 %v2008_v12, %v1850_v20 }
 0x48b   : > { %2009 = vst [vmem:[%s2642_s17 + $0x20] sm:$0xff] %v1856_v39  ;;  %2010 = vst [vmem:[%s2642_s17 + $0x28] sm:$0xff] %v1857_v42 }
 0x48c   : > { %2011 = vst [vmem:[%s2642_s17 + $0x30] sm:$0xff] %v1858_v3  ;;  %2012 = vst [vmem:[%s2642_s17 + $0x38] sm:$0xff] %v1859_v59 }
 0x48d PF: > { %s16_s21 = sadd.s32 1, %s2070_s21  }
 0x48e   : > { %p13_p4 = scmp.ge.s32.totalorder %s16_s21, 4  }
 0x490   :  { %15 = sbr.rel (!%p13_p4) target bundleno = 1 (0x1), region = 95 }

</bundles_post_ra>
